<compile_context>
chip_gen: v6e
topology: v6e:2x2x1
jax: 0.10.0
libtpu: 0.0.40
codegen_flags: <defaults>
</compile_context>

<pallas_src>
import jax
import jax.numpy as jnp
from jax.experimental import pallas as pl
from jax.experimental.pallas import tpu as pltpu


# ----------------------------------------------------------------------------
# Pallas kernel: one encoder stage = conv3x3 + ReLU + conv3x3 + ReLU (fused)
# ----------------------------------------------------------------------------
def _make_stage_kernel(N, H, W, Cin, Cmid, Cout):
    Hp, Wp = H + 2, W + 2
    P = Hp * Wp                       # zero-padded, flattened image length
    L = (H - 1) * Wp + W              # contiguous flat window covering all valid outputs
    offs = [kh * Wp + kw for kh in range(3) for kw in range(3)]   # per-tap flat shifts

    def kernel(x_ref, w1_ref, b1_ref, w2_ref, b2_ref, mask_ref, o_ref,
               im1_ref, im2_ref, yp_ref):
        # x_ref   : (N, Cin, P)    zero-padded, flattened NCHW input
        # w1_ref  : (Cmid, 9*Cin)  ; b1_ref: (Cmid, 1)
        # w2_ref  : (Cout, 9*Cmid) ; b2_ref: (Cout, 1)
        # mask_ref: (1, L)         1.0 at valid spatial positions, 0.0 at halo columns
        # o_ref   : (N, Cout, L)   lane-dense output window (wrapper extracts valid cols)
        # im1_ref : (9*Cin, L)     VMEM im2col scratch for conv1
        # im2_ref : (9*Cmid, L)    VMEM im2col scratch for conv2
        # yp_ref  : (Cmid, P)      VMEM zero-padded flat buffer for the intermediate
        mask = mask_ref[...]
        yp_ref[...] = jnp.zeros_like(yp_ref)       # halo stays zero for every batch elem

        for n in range(N):                          # batch statically unrolled (no grid)
            # ---- conv1: build im2col with 9 contiguous lane-window loads,
            #             then a single K = 9*Cin matmul on the MXU
            for t, off in enumerate(offs):
                im1_ref[t * Cin:(t + 1) * Cin, :] = x_ref[n, :, off:off + L]
            y1 = jnp.dot(w1_ref[...], im1_ref[...],
                         preferred_element_type=jnp.float32)       # (Cmid, L)
            y1 = jnp.maximum(y1 + b1_ref[...], 0.0) * mask          # ReLU, zero halo cols

            # ---- rebuild the 1-pixel halo for conv2 entirely in VMEM
            yp_ref[:, Wp + 1:Wp + 1 + L] = y1

            # ---- conv2: same scheme, K = 9*Cmid
            for t, off in enumerate(offs):
                im2_ref[t * Cmid:(t + 1) * Cmid, :] = yp_ref[:, off:off + L]
            y2 = jnp.dot(w2_ref[...], im2_ref[...],
                         preferred_element_type=jnp.float32)       # (Cout, L)
            y2 = jnp.maximum(y2 + b2_ref[...], 0.0)
            o_ref[n] = y2.astype(o_ref.dtype)

    return kernel


def _stage_forward(x_nchw, w1, b1, w2, b2):
    """One encoder stage (conv+ReLU+conv+ReLU) on NCHW input, via one pallas_call."""
    N, Cin, H, W = x_nchw.shape
    Cmid, Cout = w1.shape[0], w2.shape[0]
    Hp, Wp = H + 2, W + 2
    P = Hp * Wp
    L = (H - 1) * Wp + W

    # Padded + flattened input (tiny host-side op; the *intermediate* halo is in-kernel).
    xflat = jnp.pad(x_nchw, ((0, 0), (0, 0), (1, 1), (1, 1))).reshape(N, Cin, P)

    # Conv2d weights (Cout, Cin, 3, 3) -> (Cout, 9*Cin) with row index (kh*3+kw)*Cin + ci.
    w1_2d = jnp.transpose(w1, (0, 2, 3, 1)).reshape(Cmid, 9 * Cin)
    w2_2d = jnp.transpose(w2, (0, 2, 3, 1)).reshape(Cout, 9 * Cmid)
    b1_2d = b1.reshape(Cmid, 1)
    b2_2d = b2.reshape(Cout, 1)

    # Valid-position mask over the flat output window.
    j = jnp.arange(L, dtype=jnp.int32)
    col = (Wp + 1 + j) % Wp
    mask = ((col >= 1) & (col <= W)).astype(jnp.float32).reshape(1, L)

    kernel = _make_stage_kernel(N, H, W, Cin, Cmid, Cout)
    flops = 2 * N * L * (9 * Cin) * Cmid + 2 * N * L * (9 * Cmid) * Cout
    bytes_accessed = 4 * (N * Cin * P + Cmid * 9 * Cin + Cmid
                          + Cout * 9 * Cmid + Cout + L + N * Cout * L)

    y = pl.pallas_call(
        kernel,
        out_shape=jax.ShapeDtypeStruct((N, Cout, L), jnp.float32),
        grid=(1,),
        in_specs=[
            pl.BlockSpec((N, Cin, P), lambda i: (0, 0, 0)),
            pl.BlockSpec((Cmid, 9 * Cin), lambda i: (0, 0)),
            pl.BlockSpec((Cmid, 1), lambda i: (0, 0)),
            pl.BlockSpec((Cout, 9 * Cmid), lambda i: (0, 0)),
            pl.BlockSpec((Cout, 1), lambda i: (0, 0)),
            pl.BlockSpec((1, L), lambda i: (0, 0)),
        ],
        out_specs=pl.BlockSpec((N, Cout, L), lambda i: (0, 0, 0)),
        scratch_shapes=[
            pltpu.VMEM((9 * Cin, L), jnp.float32),
            pltpu.VMEM((9 * Cmid, L), jnp.float32),
            pltpu.VMEM((Cmid, P), jnp.float32),
        ],
        compiler_params=pltpu.CompilerParams(dimension_semantics=("arbitrary",)),
        cost_estimate=pl.CostEstimate(flops=flops, transcendentals=0,
                                      bytes_accessed=bytes_accessed),
    )(xflat, w1_2d, b1_2d, w2_2d, b2_2d, mask)

    # Extract valid positions: window index for (h, w) is h*Wp + w.
    y_ext = jnp.pad(y, ((0, 0), (0, 0), (0, Wp - W)))
    out = y_ext.reshape(N, Cout, H, Wp)[:, :, :, :W]          # (N, Cout, H, W)
    return out


# ----------------------------------------------------------------------------
# Encoder glue (maxpool + stage chaining), params, reference
# ----------------------------------------------------------------------------
def _maxpool2x2(x):
    N, C, H, W = x.shape
    return x.reshape(N, C, H // 2, 2, W // 2, 2).max(axis=(3, 5))


def init_encoder_params(key, input_channels, output_channels):
    params = []
    for cin, cout in zip(input_channels, output_channels):
        key, k1, k2, k3, k4 = jax.random.split(key, 5)
        s1 = 1.0 / (cin * 9) ** 0.5
        s2 = 1.0 / (cout * 9) ** 0.5
        params.append({
            "w1": jax.random.uniform(k1, (cout, cin, 3, 3), jnp.float32, -s1, s1),
            "b1": jax.random.uniform(k2, (cout,), jnp.float32, -s1, s1),
            "w2": jax.random.uniform(k3, (cout, cout, 3, 3), jnp.float32, -s2, s2),
            "b2": jax.random.uniform(k4, (cout,), jnp.float32, -s2, s2),
        })
    return params


def encoder_forward(params, x):
    """x: NCHW. Returns list of per-stage outputs (PyTorch Encoder semantics)."""
    outputs = []
    n_stages = len(params)
    for i, p in enumerate(params):
        x = _stage_forward(x, p["w1"], p["b1"], p["w2"], p["b2"])
        if i != n_stages - 1:
            x = _maxpool2x2(x)
        outputs.append(x)
    return outputs


def _encoder_forward_ref(params, x):
    """Pure-JAX reference (lax conv) for a correctness sanity check."""
    def conv_relu(v, w, b):
        y = jax.lax.conv_general_dilated(
            v, w, (1, 1), "SAME", dimension_numbers=("NCHW", "OIHW", "NCHW"))
        return jnp.maximum(y + b.reshape(1, -1, 1, 1), 0.0)

    outputs = []
    n_stages = len(params)
    for i, p in enumerate(params):
        x = conv_relu(x, p["w1"], p["b1"])
        x = conv_relu(x, p["w2"], p["b2"])
        if i != n_stages - 1:
            x = _maxpool2x2(x)
        outputs.append(x)
    return outputs


if __name__ == "__main__":
    input_channels = (4, 8)
    output_channels = (8, 16)

    key = jax.random.PRNGKey(0)
    kx, kp = jax.random.split(key)
    x = jax.random.normal(kx, (2, 4, 16, 16), jnp.float32)      # NCHW
    params = init_encoder_params(kp, input_channels, output_channels)

    fwd = jax.jit(encoder_forward)
    outs = fwd(params, x)
    jax.block_until_ready(outs)

    assert outs[0].shape == (2, 8, 8, 8), outs[0].shape        # after 2x2 maxpool
    assert outs[1].shape == (2, 16, 8, 8), outs[1].shape       # last stage, no pool

    refs = _encoder_forward_ref(params, x)
    for o, r in zip(outs, refs):
        assert jnp.allclose(o, r, atol=1e-4, rtol=1e-4)

    print("KERNEL_OK")
</pallas_src>

<mosaic_0001>
module attributes {stable_mosaic.version = 11 : i64} {
  func.func @kernel(%arg0: i32, %arg1: memref<2x4x324xf32, #tpu.memory_space<vmem>>, %arg2: memref<8x36xf32, #tpu.memory_space<vmem>>, %arg3: memref<8x1xf32, #tpu.memory_space<vmem>>, %arg4: memref<8x72xf32, #tpu.memory_space<vmem>>, %arg5: memref<8x1xf32, #tpu.memory_space<vmem>>, %arg6: memref<1x286xf32, #tpu.memory_space<vmem>>, %arg7: memref<2x8x286xf32, #tpu.memory_space<vmem>>, %arg8: memref<36x286xf32, #tpu.memory_space<vmem>>, %arg9: memref<72x286xf32, #tpu.memory_space<vmem>>, %arg10: memref<8x324xf32, #tpu.memory_space<vmem>>) attributes {dimension_semantics = [#tpu.dimension_semantics<arbitrary>], iteration_bounds = array<i64: 1>, scalar_prefetch = 0 : i64, scratch_operands = 3 : i64, tpu.core_type = #tpu.core_type<tc>, window_params = [{pipeline_mode = #tpu.pipeline_mode<synchronous>, transform_indices = @transform_0, window_bounds = array<i64: 2, 4, 324>}, {pipeline_mode = #tpu.pipeline_mode<synchronous>, transform_indices = @transform_1, window_bounds = array<i64: 8, 36>}, {pipeline_mode = #tpu.pipeline_mode<synchronous>, transform_indices = @transform_2, window_bounds = array<i64: 8, 1>}, {pipeline_mode = #tpu.pipeline_mode<synchronous>, transform_indices = @transform_3, window_bounds = array<i64: 8, 72>}, {pipeline_mode = #tpu.pipeline_mode<synchronous>, transform_indices = @transform_4, window_bounds = array<i64: 8, 1>}, {pipeline_mode = #tpu.pipeline_mode<synchronous>, transform_indices = @transform_5, window_bounds = array<i64: 1, 286>}, {pipeline_mode = #tpu.pipeline_mode<synchronous>, transform_indices = @transform_6, window_bounds = array<i64: 2, 8, 286>}]} {
    %c0 = arith.constant 0 : index
    %c0_0 = arith.constant 0 : index
    %0 = vector.load %arg6[%c0, %c0_0] : memref<1x286xf32, #tpu.memory_space<vmem>>, vector<1x286xf32>
    %cst = arith.constant 0.000000e+00 : f32
    %1 = vector.broadcast %cst : f32 to vector<8x324xf32>
    %c0_1 = arith.constant 0 : index
    %c0_2 = arith.constant 0 : index
    %2 = vector.load %arg10[%c0_1, %c0_2] : memref<8x324xf32, #tpu.memory_space<vmem>>, vector<8x324xf32>
    tpu.vector_store %arg10[%c0_1, %c0_2], %1 {strides = array<i32>} : memref<8x324xf32, #tpu.memory_space<vmem>>, vector<8x324xf32>,
    %c0_3 = arith.constant 0 : index
    %c0_4 = arith.constant 0 : index
    %c0_5 = arith.constant 0 : index
    %3 = vector.load %arg1[%c0_3, %c0_4, %c0_5] : memref<2x4x324xf32, #tpu.memory_space<vmem>>, vector<1x4x286xf32>
    %4 = vector.shape_cast %3 : vector<1x4x286xf32> to vector<4x286xf32>
    %c0_6 = arith.constant 0 : index
    %c0_7 = arith.constant 0 : index
    %5 = vector.load %arg8[%c0_6, %c0_7] : memref<36x286xf32, #tpu.memory_space<vmem>>, vector<4x286xf32>
    tpu.vector_store %arg8[%c0_6, %c0_7], %4 {strides = array<i32>} : memref<36x286xf32, #tpu.memory_space<vmem>>, vector<4x286xf32>,
    %c0_8 = arith.constant 0 : index
    %c0_9 = arith.constant 0 : index
    %c1 = arith.constant 1 : index
    %6 = vector.load %arg1[%c0_8, %c0_9, %c1] : memref<2x4x324xf32, #tpu.memory_space<vmem>>, vector<1x4x286xf32>
    %7 = vector.shape_cast %6 : vector<1x4x286xf32> to vector<4x286xf32>
    %c4 = arith.constant 4 : index
    %c0_10 = arith.constant 0 : index
    %8 = vector.load %arg8[%c4, %c0_10] : memref<36x286xf32, #tpu.memory_space<vmem>>, vector<4x286xf32>
    tpu.vector_store %arg8[%c4, %c0_10], %7 {strides = array<i32>} : memref<36x286xf32, #tpu.memory_space<vmem>>, vector<4x286xf32>,
    %c0_11 = arith.constant 0 : index
    %c0_12 = arith.constant 0 : index
    %c2 = arith.constant 2 : index
    %9 = vector.load %arg1[%c0_11, %c0_12, %c2] : memref<2x4x324xf32, #tpu.memory_space<vmem>>, vector<1x4x286xf32>
    %10 = vector.shape_cast %9 : vector<1x4x286xf32> to vector<4x286xf32>
    %c8 = arith.constant 8 : index
    %c0_13 = arith.constant 0 : index
    %11 = vector.load %arg8[%c8, %c0_13] : memref<36x286xf32, #tpu.memory_space<vmem>>, vector<4x286xf32>
    tpu.vector_store %arg8[%c8, %c0_13], %10 {strides = array<i32>} : memref<36x286xf32, #tpu.memory_space<vmem>>, vector<4x286xf32>,
    %c0_14 = arith.constant 0 : index
    %c0_15 = arith.constant 0 : index
    %c18 = arith.constant 18 : index
    %12 = vector.load %arg1[%c0_14, %c0_15, %c18] : memref<2x4x324xf32, #tpu.memory_space<vmem>>, vector<1x4x286xf32>
    %13 = vector.shape_cast %12 : vector<1x4x286xf32> to vector<4x286xf32>
    %c12 = arith.constant 12 : index
    %c0_16 = arith.constant 0 : index
    %14 = vector.load %arg8[%c12, %c0_16] : memref<36x286xf32, #tpu.memory_space<vmem>>, vector<4x286xf32>
    tpu.vector_store %arg8[%c12, %c0_16], %13 {strides = array<i32>} : memref<36x286xf32, #tpu.memory_space<vmem>>, vector<4x286xf32>,
    %c0_17 = arith.constant 0 : index
    %c0_18 = arith.constant 0 : index
    %c19 = arith.constant 19 : index
    %15 = vector.load %arg1[%c0_17, %c0_18, %c19] : memref<2x4x324xf32, #tpu.memory_space<vmem>>, vector<1x4x286xf32>
    %16 = vector.shape_cast %15 : vector<1x4x286xf32> to vector<4x286xf32>
    %c16 = arith.constant 16 : index
    %c0_19 = arith.constant 0 : index
    %17 = vector.load %arg8[%c16, %c0_19] : memref<36x286xf32, #tpu.memory_space<vmem>>, vector<4x286xf32>
    tpu.vector_store %arg8[%c16, %c0_19], %16 {strides = array<i32>} : memref<36x286xf32, #tpu.memory_space<vmem>>, vector<4x286xf32>,
    %c0_20 = arith.constant 0 : index
    %c0_21 = arith.constant 0 : index
    %c20 = arith.constant 20 : index
    %18 = vector.load %arg1[%c0_20, %c0_21, %c20] : memref<2x4x324xf32, #tpu.memory_space<vmem>>, vector<1x4x286xf32>
    %19 = vector.shape_cast %18 : vector<1x4x286xf32> to vector<4x286xf32>
    %c20_22 = arith.constant 20 : index
    %c0_23 = arith.constant 0 : index
    %20 = vector.load %arg8[%c20_22, %c0_23] : memref<36x286xf32, #tpu.memory_space<vmem>>, vector<4x286xf32>
    tpu.vector_store %arg8[%c20_22, %c0_23], %19 {strides = array<i32>} : memref<36x286xf32, #tpu.memory_space<vmem>>, vector<4x286xf32>,
    %c0_24 = arith.constant 0 : index
    %c0_25 = arith.constant 0 : index
    %c36 = arith.constant 36 : index
    %21 = vector.load %arg1[%c0_24, %c0_25, %c36] : memref<2x4x324xf32, #tpu.memory_space<vmem>>, vector<1x4x286xf32>
    %22 = vector.shape_cast %21 : vector<1x4x286xf32> to vector<4x286xf32>
    %c24 = arith.constant 24 : index
    %c0_26 = arith.constant 0 : index
    %23 = vector.load %arg8[%c24, %c0_26] : memref<36x286xf32, #tpu.memory_space<vmem>>, vector<4x286xf32>
    tpu.vector_store %arg8[%c24, %c0_26], %22 {strides = array<i32>} : memref<36x286xf32, #tpu.memory_space<vmem>>, vector<4x286xf32>,
    %c0_27 = arith.constant 0 : index
    %c0_28 = arith.constant 0 : index
    %c37 = arith.constant 37 : index
    %24 = vector.load %arg1[%c0_27, %c0_28, %c37] : memref<2x4x324xf32, #tpu.memory_space<vmem>>, vector<1x4x286xf32>
    %25 = vector.shape_cast %24 : vector<1x4x286xf32> to vector<4x286xf32>
    %c28 = arith.constant 28 : index
    %c0_29 = arith.constant 0 : index
    %26 = vector.load %arg8[%c28, %c0_29] : memref<36x286xf32, #tpu.memory_space<vmem>>, vector<4x286xf32>
    tpu.vector_store %arg8[%c28, %c0_29], %25 {strides = array<i32>} : memref<36x286xf32, #tpu.memory_space<vmem>>, vector<4x286xf32>,
    %c0_30 = arith.constant 0 : index
    %c0_31 = arith.constant 0 : index
    %c38 = arith.constant 38 : index
    %27 = vector.load %arg1[%c0_30, %c0_31, %c38] : memref<2x4x324xf32, #tpu.memory_space<vmem>>, vector<1x4x286xf32>
    %28 = vector.shape_cast %27 : vector<1x4x286xf32> to vector<4x286xf32>
    %c32 = arith.constant 32 : index
    %c0_32 = arith.constant 0 : index
    %29 = vector.load %arg8[%c32, %c0_32] : memref<36x286xf32, #tpu.memory_space<vmem>>, vector<4x286xf32>
    tpu.vector_store %arg8[%c32, %c0_32], %28 {strides = array<i32>} : memref<36x286xf32, #tpu.memory_space<vmem>>, vector<4x286xf32>,
    %c0_33 = arith.constant 0 : index
    %c0_34 = arith.constant 0 : index
    %30 = vector.load %arg2[%c0_33, %c0_34] : memref<8x36xf32, #tpu.memory_space<vmem>>, vector<8x36xf32>
    %c0_35 = arith.constant 0 : index
    %c0_36 = arith.constant 0 : index
    %31 = vector.load %arg8[%c0_35, %c0_36] : memref<36x286xf32, #tpu.memory_space<vmem>>, vector<36x286xf32>
    %cst_37 = arith.constant dense<0.000000e+00> : vector<8x286xf32>
    %32 = tpu.matmul %30, %31, %cst_37 {dimension_numbers = #tpu.dot_dimension_numbers<[1], [0], [0], [1], [0, 0, 1, 1], [], []>} : vector<8x36xf32>, vector<36x286xf32>, vector<8x286xf32> -> vector<8x286xf32>
    %c0_38 = arith.constant 0 : index
    %c0_39 = arith.constant 0 : index
    %33 = vector.load %arg3[%c0_38, %c0_39] : memref<8x1xf32, #tpu.memory_space<vmem>>, vector<8x1xf32>
    %34 = vector.broadcast %33 : vector<8x1xf32> to vector<8x286xf32>
    %35 = arith.addf %32, %34 : vector<8x286xf32>
    %cst_40 = arith.constant 0.000000e+00 : f32
    %36 = vector.broadcast %cst_40 : f32 to vector<8x286xf32>
    %37 = arith.maximumf %35, %36 : vector<8x286xf32>
    %38 = vector.broadcast %0 : vector<1x286xf32> to vector<8x286xf32>
    %39 = arith.mulf %37, %38 : vector<8x286xf32>
    %c0_41 = arith.constant 0 : index
    %c19_42 = arith.constant 19 : index
    %40 = vector.load %arg10[%c0_41, %c19_42] : memref<8x324xf32, #tpu.memory_space<vmem>>, vector<8x286xf32>
    tpu.vector_store %arg10[%c0_41, %c19_42], %39 {strides = array<i32>} : memref<8x324xf32, #tpu.memory_space<vmem>>, vector<8x286xf32>,
    %c0_43 = arith.constant 0 : index
    %c0_44 = arith.constant 0 : index
    %41 = vector.load %arg10[%c0_43, %c0_44] : memref<8x324xf32, #tpu.memory_space<vmem>>, vector<8x286xf32>
    %c0_45 = arith.constant 0 : index
    %c0_46 = arith.constant 0 : index
    %42 = vector.load %arg9[%c0_45, %c0_46] : memref<72x286xf32, #tpu.memory_space<vmem>>, vector<8x286xf32>
    tpu.vector_store %arg9[%c0_45, %c0_46], %41 {strides = array<i32>} : memref<72x286xf32, #tpu.memory_space<vmem>>, vector<8x286xf32>,
    %c0_47 = arith.constant 0 : index
    %c1_48 = arith.constant 1 : index
    %43 = vector.load %arg10[%c0_47, %c1_48] : memref<8x324xf32, #tpu.memory_space<vmem>>, vector<8x286xf32>
    %c8_49 = arith.constant 8 : index
    %c0_50 = arith.constant 0 : index
    %44 = vector.load %arg9[%c8_49, %c0_50] : memref<72x286xf32, #tpu.memory_space<vmem>>, vector<8x286xf32>
    tpu.vector_store %arg9[%c8_49, %c0_50], %43 {strides = array<i32>} : memref<72x286xf32, #tpu.memory_space<vmem>>, vector<8x286xf32>,
    %c0_51 = arith.constant 0 : index
    %c2_52 = arith.constant 2 : index
    %45 = vector.load %arg10[%c0_51, %c2_52] : memref<8x324xf32, #tpu.memory_space<vmem>>, vector<8x286xf32>
    %c16_53 = arith.constant 16 : index
    %c0_54 = arith.constant 0 : index
    %46 = vector.load %arg9[%c16_53, %c0_54] : memref<72x286xf32, #tpu.memory_space<vmem>>, vector<8x286xf32>
    tpu.vector_store %arg9[%c16_53, %c0_54], %45 {strides = array<i32>} : memref<72x286xf32, #tpu.memory_space<vmem>>, vector<8x286xf32>,
    %c0_55 = arith.constant 0 : index
    %c18_56 = arith.constant 18 : index
    %47 = vector.load %arg10[%c0_55, %c18_56] : memref<8x324xf32, #tpu.memory_space<vmem>>, vector<8x286xf32>
    %c24_57 = arith.constant 24 : index
    %c0_58 = arith.constant 0 : index
    %48 = vector.load %arg9[%c24_57, %c0_58] : memref<72x286xf32, #tpu.memory_space<vmem>>, vector<8x286xf32>
    tpu.vector_store %arg9[%c24_57, %c0_58], %47 {strides = array<i32>} : memref<72x286xf32, #tpu.memory_space<vmem>>, vector<8x286xf32>,
    %c0_59 = arith.constant 0 : index
    %c19_60 = arith.constant 19 : index
    %49 = vector.load %arg10[%c0_59, %c19_60] : memref<8x324xf32, #tpu.memory_space<vmem>>, vector<8x286xf32>
    %c32_61 = arith.constant 32 : index
    %c0_62 = arith.constant 0 : index
    %50 = vector.load %arg9[%c32_61, %c0_62] : memref<72x286xf32, #tpu.memory_space<vmem>>, vector<8x286xf32>
    tpu.vector_store %arg9[%c32_61, %c0_62], %49 {strides = array<i32>} : memref<72x286xf32, #tpu.memory_space<vmem>>, vector<8x286xf32>,
    %c0_63 = arith.constant 0 : index
    %c20_64 = arith.constant 20 : index
    %51 = vector.load %arg10[%c0_63, %c20_64] : memref<8x324xf32, #tpu.memory_space<vmem>>, vector<8x286xf32>
    %c40 = arith.constant 40 : index
    %c0_65 = arith.constant 0 : index
    %52 = vector.load %arg9[%c40, %c0_65] : memref<72x286xf32, #tpu.memory_space<vmem>>, vector<8x286xf32>
    tpu.vector_store %arg9[%c40, %c0_65], %51 {strides = array<i32>} : memref<72x286xf32, #tpu.memory_space<vmem>>, vector<8x286xf32>,
    %c0_66 = arith.constant 0 : index
    %c36_67 = arith.constant 36 : index
    %53 = vector.load %arg10[%c0_66, %c36_67] : memref<8x324xf32, #tpu.memory_space<vmem>>, vector<8x286xf32>
    %c48 = arith.constant 48 : index
    %c0_68 = arith.constant 0 : index
    %54 = vector.load %arg9[%c48, %c0_68] : memref<72x286xf32, #tpu.memory_space<vmem>>, vector<8x286xf32>
    tpu.vector_store %arg9[%c48, %c0_68], %53 {strides = array<i32>} : memref<72x286xf32, #tpu.memory_space<vmem>>, vector<8x286xf32>,
    %c0_69 = arith.constant 0 : index
    %c37_70 = arith.constant 37 : index
    %55 = vector.load %arg10[%c0_69, %c37_70] : memref<8x324xf32, #tpu.memory_space<vmem>>, vector<8x286xf32>
    %c56 = arith.constant 56 : index
    %c0_71 = arith.constant 0 : index
    %56 = vector.load %arg9[%c56, %c0_71] : memref<72x286xf32, #tpu.memory_space<vmem>>, vector<8x286xf32>
    tpu.vector_store %arg9[%c56, %c0_71], %55 {strides = array<i32>} : memref<72x286xf32, #tpu.memory_space<vmem>>, vector<8x286xf32>,
    %c0_72 = arith.constant 0 : index
    %c38_73 = arith.constant 38 : index
    %57 = vector.load %arg10[%c0_72, %c38_73] : memref<8x324xf32, #tpu.memory_space<vmem>>, vector<8x286xf32>
    %c64 = arith.constant 64 : index
    %c0_74 = arith.constant 0 : index
    %58 = vector.load %arg9[%c64, %c0_74] : memref<72x286xf32, #tpu.memory_space<vmem>>, vector<8x286xf32>
    tpu.vector_store %arg9[%c64, %c0_74], %57 {strides = array<i32>} : memref<72x286xf32, #tpu.memory_space<vmem>>, vector<8x286xf32>,
    %c0_75 = arith.constant 0 : index
    %c0_76 = arith.constant 0 : index
    %59 = vector.load %arg4[%c0_75, %c0_76] : memref<8x72xf32, #tpu.memory_space<vmem>>, vector<8x72xf32>
    %c0_77 = arith.constant 0 : index
    %c0_78 = arith.constant 0 : index
    %60 = vector.load %arg9[%c0_77, %c0_78] : memref<72x286xf32, #tpu.memory_space<vmem>>, vector<72x286xf32>
    %cst_79 = arith.constant dense<0.000000e+00> : vector<8x286xf32>
    %61 = tpu.matmul %59, %60, %cst_79 {dimension_numbers = #tpu.dot_dimension_numbers<[1], [0], [0], [1], [0, 0, 1, 1], [], []>} : vector<8x72xf32>, vector<72x286xf32>, vector<8x286xf32> -> vector<8x286xf32>
    %c0_80 = arith.constant 0 : index
    %c0_81 = arith.constant 0 : index
    %62 = vector.load %arg5[%c0_80, %c0_81] : memref<8x1xf32, #tpu.memory_space<vmem>>, vector<8x1xf32>
    %63 = vector.broadcast %62 : vector<8x1xf32> to vector<8x286xf32>
    %64 = arith.addf %61, %63 : vector<8x286xf32>
    %cst_82 = arith.constant 0.000000e+00 : f32
    %65 = vector.broadcast %cst_82 : f32 to vector<8x286xf32>
    %66 = arith.maximumf %64, %65 : vector<8x286xf32>
    %c0_83 = arith.constant 0 : index
    %c0_84 = arith.constant 0 : index
    %c0_85 = arith.constant 0 : index
    %67 = vector.load %arg7[%c0_83, %c0_84, %c0_85] : memref<2x8x286xf32, #tpu.memory_space<vmem>>, vector<1x8x286xf32>
    %68 = vector.shape_cast %67 : vector<1x8x286xf32> to vector<8x286xf32>
    %69 = vector.shape_cast %66 : vector<8x286xf32> to vector<1x8x286xf32>
    tpu.vector_store %arg7[%c0_83, %c0_84, %c0_85], %69 {strides = array<i32>} : memref<2x8x286xf32, #tpu.memory_space<vmem>>, vector<1x8x286xf32>,
    %c1_86 = arith.constant 1 : index
    %c0_87 = arith.constant 0 : index
    %c0_88 = arith.constant 0 : index
    %70 = vector.load %arg1[%c1_86, %c0_87, %c0_88] : memref<2x4x324xf32, #tpu.memory_space<vmem>>, vector<1x4x286xf32>
    %71 = vector.shape_cast %70 : vector<1x4x286xf32> to vector<4x286xf32>
    %c0_89 = arith.constant 0 : index
    %c0_90 = arith.constant 0 : index
    %72 = vector.load %arg8[%c0_89, %c0_90] : memref<36x286xf32, #tpu.memory_space<vmem>>, vector<4x286xf32>
    tpu.vector_store %arg8[%c0_89, %c0_90], %71 {strides = array<i32>} : memref<36x286xf32, #tpu.memory_space<vmem>>, vector<4x286xf32>,
    %c1_91 = arith.constant 1 : index
    %c0_92 = arith.constant 0 : index
    %c1_93 = arith.constant 1 : index
    %73 = vector.load %arg1[%c1_91, %c0_92, %c1_93] : memref<2x4x324xf32, #tpu.memory_space<vmem>>, vector<1x4x286xf32>
    %74 = vector.shape_cast %73 : vector<1x4x286xf32> to vector<4x286xf32>
    %c4_94 = arith.constant 4 : index
    %c0_95 = arith.constant 0 : index
    %75 = vector.load %arg8[%c4_94, %c0_95] : memref<36x286xf32, #tpu.memory_space<vmem>>, vector<4x286xf32>
    tpu.vector_store %arg8[%c4_94, %c0_95], %74 {strides = array<i32>} : memref<36x286xf32, #tpu.memory_space<vmem>>, vector<4x286xf32>,
    %c1_96 = arith.constant 1 : index
    %c0_97 = arith.constant 0 : index
    %c2_98 = arith.constant 2 : index
    %76 = vector.load %arg1[%c1_96, %c0_97, %c2_98] : memref<2x4x324xf32, #tpu.memory_space<vmem>>, vector<1x4x286xf32>
    %77 = vector.shape_cast %76 : vector<1x4x286xf32> to vector<4x286xf32>
    %c8_99 = arith.constant 8 : index
    %c0_100 = arith.constant 0 : index
    %78 = vector.load %arg8[%c8_99, %c0_100] : memref<36x286xf32, #tpu.memory_space<vmem>>, vector<4x286xf32>
    tpu.vector_store %arg8[%c8_99, %c0_100], %77 {strides = array<i32>} : memref<36x286xf32, #tpu.memory_space<vmem>>, vector<4x286xf32>,
    %c1_101 = arith.constant 1 : index
    %c0_102 = arith.constant 0 : index
    %c18_103 = arith.constant 18 : index
    %79 = vector.load %arg1[%c1_101, %c0_102, %c18_103] : memref<2x4x324xf32, #tpu.memory_space<vmem>>, vector<1x4x286xf32>
    %80 = vector.shape_cast %79 : vector<1x4x286xf32> to vector<4x286xf32>
    %c12_104 = arith.constant 12 : index
    %c0_105 = arith.constant 0 : index
    %81 = vector.load %arg8[%c12_104, %c0_105] : memref<36x286xf32, #tpu.memory_space<vmem>>, vector<4x286xf32>
    tpu.vector_store %arg8[%c12_104, %c0_105], %80 {strides = array<i32>} : memref<36x286xf32, #tpu.memory_space<vmem>>, vector<4x286xf32>,
    %c1_106 = arith.constant 1 : index
    %c0_107 = arith.constant 0 : index
    %c19_108 = arith.constant 19 : index
    %82 = vector.load %arg1[%c1_106, %c0_107, %c19_108] : memref<2x4x324xf32, #tpu.memory_space<vmem>>, vector<1x4x286xf32>
    %83 = vector.shape_cast %82 : vector<1x4x286xf32> to vector<4x286xf32>
    %c16_109 = arith.constant 16 : index
    %c0_110 = arith.constant 0 : index
    %84 = vector.load %arg8[%c16_109, %c0_110] : memref<36x286xf32, #tpu.memory_space<vmem>>, vector<4x286xf32>
    tpu.vector_store %arg8[%c16_109, %c0_110], %83 {strides = array<i32>} : memref<36x286xf32, #tpu.memory_space<vmem>>, vector<4x286xf32>,
    %c1_111 = arith.constant 1 : index
    %c0_112 = arith.constant 0 : index
    %c20_113 = arith.constant 20 : index
    %85 = vector.load %arg1[%c1_111, %c0_112, %c20_113] : memref<2x4x324xf32, #tpu.memory_space<vmem>>, vector<1x4x286xf32>
    %86 = vector.shape_cast %85 : vector<1x4x286xf32> to vector<4x286xf32>
    %c20_114 = arith.constant 20 : index
    %c0_115 = arith.constant 0 : index
    %87 = vector.load %arg8[%c20_114, %c0_115] : memref<36x286xf32, #tpu.memory_space<vmem>>, vector<4x286xf32>
    tpu.vector_store %arg8[%c20_114, %c0_115], %86 {strides = array<i32>} : memref<36x286xf32, #tpu.memory_space<vmem>>, vector<4x286xf32>,
    %c1_116 = arith.constant 1 : index
    %c0_117 = arith.constant 0 : index
    %c36_118 = arith.constant 36 : index
    %88 = vector.load %arg1[%c1_116, %c0_117, %c36_118] : memref<2x4x324xf32, #tpu.memory_space<vmem>>, vector<1x4x286xf32>
    %89 = vector.shape_cast %88 : vector<1x4x286xf32> to vector<4x286xf32>
    %c24_119 = arith.constant 24 : index
    %c0_120 = arith.constant 0 : index
    %90 = vector.load %arg8[%c24_119, %c0_120] : memref<36x286xf32, #tpu.memory_space<vmem>>, vector<4x286xf32>
    tpu.vector_store %arg8[%c24_119, %c0_120], %89 {strides = array<i32>} : memref<36x286xf32, #tpu.memory_space<vmem>>, vector<4x286xf32>,
    %c1_121 = arith.constant 1 : index
    %c0_122 = arith.constant 0 : index
    %c37_123 = arith.constant 37 : index
    %91 = vector.load %arg1[%c1_121, %c0_122, %c37_123] : memref<2x4x324xf32, #tpu.memory_space<vmem>>, vector<1x4x286xf32>
    %92 = vector.shape_cast %91 : vector<1x4x286xf32> to vector<4x286xf32>
    %c28_124 = arith.constant 28 : index
    %c0_125 = arith.constant 0 : index
    %93 = vector.load %arg8[%c28_124, %c0_125] : memref<36x286xf32, #tpu.memory_space<vmem>>, vector<4x286xf32>
    tpu.vector_store %arg8[%c28_124, %c0_125], %92 {strides = array<i32>} : memref<36x286xf32, #tpu.memory_space<vmem>>, vector<4x286xf32>,
    %c1_126 = arith.constant 1 : index
    %c0_127 = arith.constant 0 : index
    %c38_128 = arith.constant 38 : index
    %94 = vector.load %arg1[%c1_126, %c0_127, %c38_128] : memref<2x4x324xf32, #tpu.memory_space<vmem>>, vector<1x4x286xf32>
    %95 = vector.shape_cast %94 : vector<1x4x286xf32> to vector<4x286xf32>
    %c32_129 = arith.constant 32 : index
    %c0_130 = arith.constant 0 : index
    %96 = vector.load %arg8[%c32_129, %c0_130] : memref<36x286xf32, #tpu.memory_space<vmem>>, vector<4x286xf32>
    tpu.vector_store %arg8[%c32_129, %c0_130], %95 {strides = array<i32>} : memref<36x286xf32, #tpu.memory_space<vmem>>, vector<4x286xf32>,
    %c0_131 = arith.constant 0 : index
    %c0_132 = arith.constant 0 : index
    %97 = vector.load %arg2[%c0_131, %c0_132] : memref<8x36xf32, #tpu.memory_space<vmem>>, vector<8x36xf32>
    %c0_133 = arith.constant 0 : index
    %c0_134 = arith.constant 0 : index
    %98 = vector.load %arg8[%c0_133, %c0_134] : memref<36x286xf32, #tpu.memory_space<vmem>>, vector<36x286xf32>
    %cst_135 = arith.constant dense<0.000000e+00> : vector<8x286xf32>
    %99 = tpu.matmul %97, %98, %cst_135 {dimension_numbers = #tpu.dot_dimension_numbers<[1], [0], [0], [1], [0, 0, 1, 1], [], []>} : vector<8x36xf32>, vector<36x286xf32>, vector<8x286xf32> -> vector<8x286xf32>
    %c0_136 = arith.constant 0 : index
    %c0_137 = arith.constant 0 : index
    %100 = vector.load %arg3[%c0_136, %c0_137] : memref<8x1xf32, #tpu.memory_space<vmem>>, vector<8x1xf32>
    %101 = vector.broadcast %100 : vector<8x1xf32> to vector<8x286xf32>
    %102 = arith.addf %99, %101 : vector<8x286xf32>
    %cst_138 = arith.constant 0.000000e+00 : f32
    %103 = vector.broadcast %cst_138 : f32 to vector<8x286xf32>
    %104 = arith.maximumf %102, %103 : vector<8x286xf32>
    %105 = vector.broadcast %0 : vector<1x286xf32> to vector<8x286xf32>
    %106 = arith.mulf %104, %105 : vector<8x286xf32>
    %c0_139 = arith.constant 0 : index
    %c19_140 = arith.constant 19 : index
    %107 = vector.load %arg10[%c0_139, %c19_140] : memref<8x324xf32, #tpu.memory_space<vmem>>, vector<8x286xf32>
    tpu.vector_store %arg10[%c0_139, %c19_140], %106 {strides = array<i32>} : memref<8x324xf32, #tpu.memory_space<vmem>>, vector<8x286xf32>,
    %c0_141 = arith.constant 0 : index
    %c0_142 = arith.constant 0 : index
    %108 = vector.load %arg10[%c0_141, %c0_142] : memref<8x324xf32, #tpu.memory_space<vmem>>, vector<8x286xf32>
    %c0_143 = arith.constant 0 : index
    %c0_144 = arith.constant 0 : index
    %109 = vector.load %arg9[%c0_143, %c0_144] : memref<72x286xf32, #tpu.memory_space<vmem>>, vector<8x286xf32>
    tpu.vector_store %arg9[%c0_143, %c0_144], %108 {strides = array<i32>} : memref<72x286xf32, #tpu.memory_space<vmem>>, vector<8x286xf32>,
    %c0_145 = arith.constant 0 : index
    %c1_146 = arith.constant 1 : index
    %110 = vector.load %arg10[%c0_145, %c1_146] : memref<8x324xf32, #tpu.memory_space<vmem>>, vector<8x286xf32>
    %c8_147 = arith.constant 8 : index
    %c0_148 = arith.constant 0 : index
    %111 = vector.load %arg9[%c8_147, %c0_148] : memref<72x286xf32, #tpu.memory_space<vmem>>, vector<8x286xf32>
    tpu.vector_store %arg9[%c8_147, %c0_148], %110 {strides = array<i32>} : memref<72x286xf32, #tpu.memory_space<vmem>>, vector<8x286xf32>,
    %c0_149 = arith.constant 0 : index
    %c2_150 = arith.constant 2 : index
    %112 = vector.load %arg10[%c0_149, %c2_150] : memref<8x324xf32, #tpu.memory_space<vmem>>, vector<8x286xf32>
    %c16_151 = arith.constant 16 : index
    %c0_152 = arith.constant 0 : index
    %113 = vector.load %arg9[%c16_151, %c0_152] : memref<72x286xf32, #tpu.memory_space<vmem>>, vector<8x286xf32>
    tpu.vector_store %arg9[%c16_151, %c0_152], %112 {strides = array<i32>} : memref<72x286xf32, #tpu.memory_space<vmem>>, vector<8x286xf32>,
    %c0_153 = arith.constant 0 : index
    %c18_154 = arith.constant 18 : index
    %114 = vector.load %arg10[%c0_153, %c18_154] : memref<8x324xf32, #tpu.memory_space<vmem>>, vector<8x286xf32>
    %c24_155 = arith.constant 24 : index
    %c0_156 = arith.constant 0 : index
    %115 = vector.load %arg9[%c24_155, %c0_156] : memref<72x286xf32, #tpu.memory_space<vmem>>, vector<8x286xf32>
    tpu.vector_store %arg9[%c24_155, %c0_156], %114 {strides = array<i32>} : memref<72x286xf32, #tpu.memory_space<vmem>>, vector<8x286xf32>,
    %c0_157 = arith.constant 0 : index
    %c19_158 = arith.constant 19 : index
    %116 = vector.load %arg10[%c0_157, %c19_158] : memref<8x324xf32, #tpu.memory_space<vmem>>, vector<8x286xf32>
    %c32_159 = arith.constant 32 : index
    %c0_160 = arith.constant 0 : index
    %117 = vector.load %arg9[%c32_159, %c0_160] : memref<72x286xf32, #tpu.memory_space<vmem>>, vector<8x286xf32>
    tpu.vector_store %arg9[%c32_159, %c0_160], %116 {strides = array<i32>} : memref<72x286xf32, #tpu.memory_space<vmem>>, vector<8x286xf32>,
    %c0_161 = arith.constant 0 : index
    %c20_162 = arith.constant 20 : index
    %118 = vector.load %arg10[%c0_161, %c20_162] : memref<8x324xf32, #tpu.memory_space<vmem>>, vector<8x286xf32>
    %c40_163 = arith.constant 40 : index
    %c0_164 = arith.constant 0 : index
    %119 = vector.load %arg9[%c40_163, %c0_164] : memref<72x286xf32, #tpu.memory_space<vmem>>, vector<8x286xf32>
    tpu.vector_store %arg9[%c40_163, %c0_164], %118 {strides = array<i32>} : memref<72x286xf32, #tpu.memory_space<vmem>>, vector<8x286xf32>,
    %c0_165 = arith.constant 0 : index
    %c36_166 = arith.constant 36 : index
    %120 = vector.load %arg10[%c0_165, %c36_166] : memref<8x324xf32, #tpu.memory_space<vmem>>, vector<8x286xf32>
    %c48_167 = arith.constant 48 : index
    %c0_168 = arith.constant 0 : index
    %121 = vector.load %arg9[%c48_167, %c0_168] : memref<72x286xf32, #tpu.memory_space<vmem>>, vector<8x286xf32>
    tpu.vector_store %arg9[%c48_167, %c0_168], %120 {strides = array<i32>} : memref<72x286xf32, #tpu.memory_space<vmem>>, vector<8x286xf32>,
    %c0_169 = arith.constant 0 : index
    %c37_170 = arith.constant 37 : index
    %122 = vector.load %arg10[%c0_169, %c37_170] : memref<8x324xf32, #tpu.memory_space<vmem>>, vector<8x286xf32>
    %c56_171 = arith.constant 56 : index
    %c0_172 = arith.constant 0 : index
    %123 = vector.load %arg9[%c56_171, %c0_172] : memref<72x286xf32, #tpu.memory_space<vmem>>, vector<8x286xf32>
    tpu.vector_store %arg9[%c56_171, %c0_172], %122 {strides = array<i32>} : memref<72x286xf32, #tpu.memory_space<vmem>>, vector<8x286xf32>,
    %c0_173 = arith.constant 0 : index
    %c38_174 = arith.constant 38 : index
    %124 = vector.load %arg10[%c0_173, %c38_174] : memref<8x324xf32, #tpu.memory_space<vmem>>, vector<8x286xf32>
    %c64_175 = arith.constant 64 : index
    %c0_176 = arith.constant 0 : index
    %125 = vector.load %arg9[%c64_175, %c0_176] : memref<72x286xf32, #tpu.memory_space<vmem>>, vector<8x286xf32>
    tpu.vector_store %arg9[%c64_175, %c0_176], %124 {strides = array<i32>} : memref<72x286xf32, #tpu.memory_space<vmem>>, vector<8x286xf32>,
    %c0_177 = arith.constant 0 : index
    %c0_178 = arith.constant 0 : index
    %126 = vector.load %arg4[%c0_177, %c0_178] : memref<8x72xf32, #tpu.memory_space<vmem>>, vector<8x72xf32>
    %c0_179 = arith.constant 0 : index
    %c0_180 = arith.constant 0 : index
    %127 = vector.load %arg9[%c0_179, %c0_180] : memref<72x286xf32, #tpu.memory_space<vmem>>, vector<72x286xf32>
    %cst_181 = arith.constant dense<0.000000e+00> : vector<8x286xf32>
    %128 = tpu.matmul %126, %127, %cst_181 {dimension_numbers = #tpu.dot_dimension_numbers<[1], [0], [0], [1], [0, 0, 1, 1], [], []>} : vector<8x72xf32>, vector<72x286xf32>, vector<8x286xf32> -> vector<8x286xf32>
    %c0_182 = arith.constant 0 : index
    %c0_183 = arith.constant 0 : index
    %129 = vector.load %arg5[%c0_182, %c0_183] : memref<8x1xf32, #tpu.memory_space<vmem>>, vector<8x1xf32>
    %130 = vector.broadcast %129 : vector<8x1xf32> to vector<8x286xf32>
    %131 = arith.addf %128, %130 : vector<8x286xf32>
    %cst_184 = arith.constant 0.000000e+00 : f32
    %132 = vector.broadcast %cst_184 : f32 to vector<8x286xf32>
    %133 = arith.maximumf %131, %132 : vector<8x286xf32>
    %c1_185 = arith.constant 1 : index
    %c0_186 = arith.constant 0 : index
    %c0_187 = arith.constant 0 : index
    %134 = vector.load %arg7[%c1_185, %c0_186, %c0_187] : memref<2x8x286xf32, #tpu.memory_space<vmem>>, vector<1x8x286xf32>
    %135 = vector.shape_cast %134 : vector<1x8x286xf32> to vector<8x286xf32>
    %136 = vector.shape_cast %133 : vector<8x286xf32> to vector<1x8x286xf32>
    tpu.vector_store %arg7[%c1_185, %c0_186, %c0_187], %136 {strides = array<i32>} : memref<2x8x286xf32, #tpu.memory_space<vmem>>, vector<1x8x286xf32>,
    return
  }
  func.func @transform_0(%arg0: i32) -> (i32, i32, i32) {
    %c0_i32 = arith.constant 0 : i32
    %c0_i32_0 = arith.constant 0 : i32
    %c0_i32_1 = arith.constant 0 : i32
    %c0_i32_2 = arith.constant 0 : i32
    return %c0_i32, %c0_i32_0, %c0_i32_1 : i32, i32, i32
  }
  func.func @transform_1(%arg0: i32) -> (i32, i32) {
    %c0_i32 = arith.constant 0 : i32
    %c0_i32_0 = arith.constant 0 : i32
    %c0_i32_1 = arith.constant 0 : i32
    return %c0_i32, %c0_i32_0 : i32, i32
  }
  func.func @transform_2(%arg0: i32) -> (i32, i32) {
    %c0_i32 = arith.constant 0 : i32
    %c0_i32_0 = arith.constant 0 : i32
    %c0_i32_1 = arith.constant 0 : i32
    return %c0_i32, %c0_i32_0 : i32, i32
  }
  func.func @transform_3(%arg0: i32) -> (i32, i32) {
    %c0_i32 = arith.constant 0 : i32
    %c0_i32_0 = arith.constant 0 : i32
    %c0_i32_1 = arith.constant 0 : i32
    return %c0_i32, %c0_i32_0 : i32, i32
  }
  func.func @transform_4(%arg0: i32) -> (i32, i32) {
    %c0_i32 = arith.constant 0 : i32
    %c0_i32_0 = arith.constant 0 : i32
    %c0_i32_1 = arith.constant 0 : i32
    return %c0_i32, %c0_i32_0 : i32, i32
  }
  func.func @transform_5(%arg0: i32) -> (i32, i32) {
    %c0_i32 = arith.constant 0 : i32
    %c0_i32_0 = arith.constant 0 : i32
    %c0_i32_1 = arith.constant 0 : i32
    return %c0_i32, %c0_i32_0 : i32, i32
  }
  func.func @transform_6(%arg0: i32) -> (i32, i32, i32) {
    %c0_i32 = arith.constant 0 : i32
    %c0_i32_0 = arith.constant 0 : i32
    %c0_i32_1 = arith.constant 0 : i32
    %c0_i32_2 = arith.constant 0 : i32
    return %c0_i32, %c0_i32_0, %c0_i32_1 : i32, i32, i32
  }
}

module attributes {stable_mosaic.version = 11 : i64} {
  func.func @kernel(%arg0: i32, %arg1: memref<2x8x100xf32, #tpu.memory_space<vmem>>, %arg2: memref<16x72xf32, #tpu.memory_space<vmem>>, %arg3: memref<16x1xf32, #tpu.memory_space<vmem>>, %arg4: memref<16x144xf32, #tpu.memory_space<vmem>>, %arg5: memref<16x1xf32, #tpu.memory_space<vmem>>, %arg6: memref<1x78xf32, #tpu.memory_space<vmem>>, %arg7: memref<2x16x78xf32, #tpu.memory_space<vmem>>, %arg8: memref<72x78xf32, #tpu.memory_space<vmem>>, %arg9: memref<144x78xf32, #tpu.memory_space<vmem>>, %arg10: memref<16x100xf32, #tpu.memory_space<vmem>>) attributes {dimension_semantics = [#tpu.dimension_semantics<arbitrary>], iteration_bounds = array<i64: 1>, scalar_prefetch = 0 : i64, scratch_operands = 3 : i64, tpu.core_type = #tpu.core_type<tc>, window_params = [{pipeline_mode = #tpu.pipeline_mode<synchronous>, transform_indices = @transform_0, window_bounds = array<i64: 2, 8, 100>}, {pipeline_mode = #tpu.pipeline_mode<synchronous>, transform_indices = @transform_1, window_bounds = array<i64: 16, 72>}, {pipeline_mode = #tpu.pipeline_mode<synchronous>, transform_indices = @transform_2, window_bounds = array<i64: 16, 1>}, {pipeline_mode = #tpu.pipeline_mode<synchronous>, transform_indices = @transform_3, window_bounds = array<i64: 16, 144>}, {pipeline_mode = #tpu.pipeline_mode<synchronous>, transform_indices = @transform_4, window_bounds = array<i64: 16, 1>}, {pipeline_mode = #tpu.pipeline_mode<synchronous>, transform_indices = @transform_5, window_bounds = array<i64: 1, 78>}, {pipeline_mode = #tpu.pipeline_mode<synchronous>, transform_indices = @transform_6, window_bounds = array<i64: 2, 16, 78>}]} {
    %c0 = arith.constant 0 : index
    %c0_0 = arith.constant 0 : index
    %0 = vector.load %arg6[%c0, %c0_0] : memref<1x78xf32, #tpu.memory_space<vmem>>, vector<1x78xf32>
    %cst = arith.constant 0.000000e+00 : f32
    %1 = vector.broadcast %cst : f32 to vector<16x100xf32>
    %c0_1 = arith.constant 0 : index
    %c0_2 = arith.constant 0 : index
    %2 = vector.load %arg10[%c0_1, %c0_2] : memref<16x100xf32, #tpu.memory_space<vmem>>, vector<16x100xf32>
    tpu.vector_store %arg10[%c0_1, %c0_2], %1 {strides = array<i32>} : memref<16x100xf32, #tpu.memory_space<vmem>>, vector<16x100xf32>,
    %c0_3 = arith.constant 0 : index
    %c0_4 = arith.constant 0 : index
    %c0_5 = arith.constant 0 : index
    %3 = vector.load %arg1[%c0_3, %c0_4, %c0_5] : memref<2x8x100xf32, #tpu.memory_space<vmem>>, vector<1x8x78xf32>
    %4 = vector.shape_cast %3 : vector<1x8x78xf32> to vector<8x78xf32>
    %c0_6 = arith.constant 0 : index
    %c0_7 = arith.constant 0 : index
    %5 = vector.load %arg8[%c0_6, %c0_7] : memref<72x78xf32, #tpu.memory_space<vmem>>, vector<8x78xf32>
    tpu.vector_store %arg8[%c0_6, %c0_7], %4 {strides = array<i32>} : memref<72x78xf32, #tpu.memory_space<vmem>>, vector<8x78xf32>,
    %c0_8 = arith.constant 0 : index
    %c0_9 = arith.constant 0 : index
    %c1 = arith.constant 1 : index
    %6 = vector.load %arg1[%c0_8, %c0_9, %c1] : memref<2x8x100xf32, #tpu.memory_space<vmem>>, vector<1x8x78xf32>
    %7 = vector.shape_cast %6 : vector<1x8x78xf32> to vector<8x78xf32>
    %c8 = arith.constant 8 : index
    %c0_10 = arith.constant 0 : index
    %8 = vector.load %arg8[%c8, %c0_10] : memref<72x78xf32, #tpu.memory_space<vmem>>, vector<8x78xf32>
    tpu.vector_store %arg8[%c8, %c0_10], %7 {strides = array<i32>} : memref<72x78xf32, #tpu.memory_space<vmem>>, vector<8x78xf32>,
    %c0_11 = arith.constant 0 : index
    %c0_12 = arith.constant 0 : index
    %c2 = arith.constant 2 : index
    %9 = vector.load %arg1[%c0_11, %c0_12, %c2] : memref<2x8x100xf32, #tpu.memory_space<vmem>>, vector<1x8x78xf32>
    %10 = vector.shape_cast %9 : vector<1x8x78xf32> to vector<8x78xf32>
    %c16 = arith.constant 16 : index
    %c0_13 = arith.constant 0 : index
    %11 = vector.load %arg8[%c16, %c0_13] : memref<72x78xf32, #tpu.memory_space<vmem>>, vector<8x78xf32>
    tpu.vector_store %arg8[%c16, %c0_13], %10 {strides = array<i32>} : memref<72x78xf32, #tpu.memory_space<vmem>>, vector<8x78xf32>,
    %c0_14 = arith.constant 0 : index
    %c0_15 = arith.constant 0 : index
    %c10 = arith.constant 10 : index
    %12 = vector.load %arg1[%c0_14, %c0_15, %c10] : memref<2x8x100xf32, #tpu.memory_space<vmem>>, vector<1x8x78xf32>
    %13 = vector.shape_cast %12 : vector<1x8x78xf32> to vector<8x78xf32>
    %c24 = arith.constant 24 : index
    %c0_16 = arith.constant 0 : index
    %14 = vector.load %arg8[%c24, %c0_16] : memref<72x78xf32, #tpu.memory_space<vmem>>, vector<8x78xf32>
    tpu.vector_store %arg8[%c24, %c0_16], %13 {strides = array<i32>} : memref<72x78xf32, #tpu.memory_space<vmem>>, vector<8x78xf32>,
    %c0_17 = arith.constant 0 : index
    %c0_18 = arith.constant 0 : index
    %c11 = arith.constant 11 : index
    %15 = vector.load %arg1[%c0_17, %c0_18, %c11] : memref<2x8x100xf32, #tpu.memory_space<vmem>>, vector<1x8x78xf32>
    %16 = vector.shape_cast %15 : vector<1x8x78xf32> to vector<8x78xf32>
    %c32 = arith.constant 32 : index
    %c0_19 = arith.constant 0 : index
    %17 = vector.load %arg8[%c32, %c0_19] : memref<72x78xf32, #tpu.memory_space<vmem>>, vector<8x78xf32>
    tpu.vector_store %arg8[%c32, %c0_19], %16 {strides = array<i32>} : memref<72x78xf32, #tpu.memory_space<vmem>>, vector<8x78xf32>,
    %c0_20 = arith.constant 0 : index
    %c0_21 = arith.constant 0 : index
    %c12 = arith.constant 12 : index
    %18 = vector.load %arg1[%c0_20, %c0_21, %c12] : memref<2x8x100xf32, #tpu.memory_space<vmem>>, vector<1x8x78xf32>
    %19 = vector.shape_cast %18 : vector<1x8x78xf32> to vector<8x78xf32>
    %c40 = arith.constant 40 : index
    %c0_22 = arith.constant 0 : index
    %20 = vector.load %arg8[%c40, %c0_22] : memref<72x78xf32, #tpu.memory_space<vmem>>, vector<8x78xf32>
    tpu.vector_store %arg8[%c40, %c0_22], %19 {strides = array<i32>} : memref<72x78xf32, #tpu.memory_space<vmem>>, vector<8x78xf32>,
    %c0_23 = arith.constant 0 : index
    %c0_24 = arith.constant 0 : index
    %c20 = arith.constant 20 : index
    %21 = vector.load %arg1[%c0_23, %c0_24, %c20] : memref<2x8x100xf32, #tpu.memory_space<vmem>>, vector<1x8x78xf32>
    %22 = vector.shape_cast %21 : vector<1x8x78xf32> to vector<8x78xf32>
    %c48 = arith.constant 48 : index
    %c0_25 = arith.constant 0 : index
    %23 = vector.load %arg8[%c48, %c0_25] : memref<72x78xf32, #tpu.memory_space<vmem>>, vector<8x78xf32>
    tpu.vector_store %arg8[%c48, %c0_25], %22 {strides = array<i32>} : memref<72x78xf32, #tpu.memory_space<vmem>>, vector<8x78xf32>,
    %c0_26 = arith.constant 0 : index
    %c0_27 = arith.constant 0 : index
    %c21 = arith.constant 21 : index
    %24 = vector.load %arg1[%c0_26, %c0_27, %c21] : memref<2x8x100xf32, #tpu.memory_space<vmem>>, vector<1x8x78xf32>
    %25 = vector.shape_cast %24 : vector<1x8x78xf32> to vector<8x78xf32>
    %c56 = arith.constant 56 : index
    %c0_28 = arith.constant 0 : index
    %26 = vector.load %arg8[%c56, %c0_28] : memref<72x78xf32, #tpu.memory_space<vmem>>, vector<8x78xf32>
    tpu.vector_store %arg8[%c56, %c0_28], %25 {strides = array<i32>} : memref<72x78xf32, #tpu.memory_space<vmem>>, vector<8x78xf32>,
    %c0_29 = arith.constant 0 : index
    %c0_30 = arith.constant 0 : index
    %c22 = arith.constant 22 : index
    %27 = vector.load %arg1[%c0_29, %c0_30, %c22] : memref<2x8x100xf32, #tpu.memory_space<vmem>>, vector<1x8x78xf32>
    %28 = vector.shape_cast %27 : vector<1x8x78xf32> to vector<8x78xf32>
    %c64 = arith.constant 64 : index
    %c0_31 = arith.constant 0 : index
    %29 = vector.load %arg8[%c64, %c0_31] : memref<72x78xf32, #tpu.memory_space<vmem>>, vector<8x78xf32>
    tpu.vector_store %arg8[%c64, %c0_31], %28 {strides = array<i32>} : memref<72x78xf32, #tpu.memory_space<vmem>>, vector<8x78xf32>,
    %c0_32 = arith.constant 0 : index
    %c0_33 = arith.constant 0 : index
    %30 = vector.load %arg2[%c0_32, %c0_33] : memref<16x72xf32, #tpu.memory_space<vmem>>, vector<16x72xf32>
    %c0_34 = arith.constant 0 : index
    %c0_35 = arith.constant 0 : index
    %31 = vector.load %arg8[%c0_34, %c0_35] : memref<72x78xf32, #tpu.memory_space<vmem>>, vector<72x78xf32>
    %cst_36 = arith.constant dense<0.000000e+00> : vector<16x78xf32>
    %32 = tpu.matmul %30, %31, %cst_36 {dimension_numbers = #tpu.dot_dimension_numbers<[1], [0], [0], [1], [0, 0, 1, 1], [], []>} : vector<16x72xf32>, vector<72x78xf32>, vector<16x78xf32> -> vector<16x78xf32>
    %c0_37 = arith.constant 0 : index
    %c0_38 = arith.constant 0 : index
    %33 = vector.load %arg3[%c0_37, %c0_38] : memref<16x1xf32, #tpu.memory_space<vmem>>, vector<16x1xf32>
    %34 = vector.broadcast %33 : vector<16x1xf32> to vector<16x78xf32>
    %35 = arith.addf %32, %34 : vector<16x78xf32>
    %cst_39 = arith.constant 0.000000e+00 : f32
    %36 = vector.broadcast %cst_39 : f32 to vector<16x78xf32>
    %37 = arith.maximumf %35, %36 : vector<16x78xf32>
    %38 = vector.broadcast %0 : vector<1x78xf32> to vector<16x78xf32>
    %39 = arith.mulf %37, %38 : vector<16x78xf32>
    %c0_40 = arith.constant 0 : index
    %c11_41 = arith.constant 11 : index
    %40 = vector.load %arg10[%c0_40, %c11_41] : memref<16x100xf32, #tpu.memory_space<vmem>>, vector<16x78xf32>
    tpu.vector_store %arg10[%c0_40, %c11_41], %39 {strides = array<i32>} : memref<16x100xf32, #tpu.memory_space<vmem>>, vector<16x78xf32>,
    %c0_42 = arith.constant 0 : index
    %c0_43 = arith.constant 0 : index
    %41 = vector.load %arg10[%c0_42, %c0_43] : memref<16x100xf32, #tpu.memory_space<vmem>>, vector<16x78xf32>
    %c0_44 = arith.constant 0 : index
    %c0_45 = arith.constant 0 : index
    %42 = vector.load %arg9[%c0_44, %c0_45] : memref<144x78xf32, #tpu.memory_space<vmem>>, vector<16x78xf32>
    tpu.vector_store %arg9[%c0_44, %c0_45], %41 {strides = array<i32>} : memref<144x78xf32, #tpu.memory_space<vmem>>, vector<16x78xf32>,
    %c0_46 = arith.constant 0 : index
    %c1_47 = arith.constant 1 : index
    %43 = vector.load %arg10[%c0_46, %c1_47] : memref<16x100xf32, #tpu.memory_space<vmem>>, vector<16x78xf32>
    %c16_48 = arith.constant 16 : index
    %c0_49 = arith.constant 0 : index
    %44 = vector.load %arg9[%c16_48, %c0_49] : memref<144x78xf32, #tpu.memory_space<vmem>>, vector<16x78xf32>
    tpu.vector_store %arg9[%c16_48, %c0_49], %43 {strides = array<i32>} : memref<144x78xf32, #tpu.memory_space<vmem>>, vector<16x78xf32>,
    %c0_50 = arith.constant 0 : index
    %c2_51 = arith.constant 2 : index
    %45 = vector.load %arg10[%c0_50, %c2_51] : memref<16x100xf32, #tpu.memory_space<vmem>>, vector<16x78xf32>
    %c32_52 = arith.constant 32 : index
    %c0_53 = arith.constant 0 : index
    %46 = vector.load %arg9[%c32_52, %c0_53] : memref<144x78xf32, #tpu.memory_space<vmem>>, vector<16x78xf32>
    tpu.vector_store %arg9[%c32_52, %c0_53], %45 {strides = array<i32>} : memref<144x78xf32, #tpu.memory_space<vmem>>, vector<16x78xf32>,
    %c0_54 = arith.constant 0 : index
    %c10_55 = arith.constant 10 : index
    %47 = vector.load %arg10[%c0_54, %c10_55] : memref<16x100xf32, #tpu.memory_space<vmem>>, vector<16x78xf32>
    %c48_56 = arith.constant 48 : index
    %c0_57 = arith.constant 0 : index
    %48 = vector.load %arg9[%c48_56, %c0_57] : memref<144x78xf32, #tpu.memory_space<vmem>>, vector<16x78xf32>
    tpu.vector_store %arg9[%c48_56, %c0_57], %47 {strides = array<i32>} : memref<144x78xf32, #tpu.memory_space<vmem>>, vector<16x78xf32>,
    %c0_58 = arith.constant 0 : index
    %c11_59 = arith.constant 11 : index
    %49 = vector.load %arg10[%c0_58, %c11_59] : memref<16x100xf32, #tpu.memory_space<vmem>>, vector<16x78xf32>
    %c64_60 = arith.constant 64 : index
    %c0_61 = arith.constant 0 : index
    %50 = vector.load %arg9[%c64_60, %c0_61] : memref<144x78xf32, #tpu.memory_space<vmem>>, vector<16x78xf32>
    tpu.vector_store %arg9[%c64_60, %c0_61], %49 {strides = array<i32>} : memref<144x78xf32, #tpu.memory_space<vmem>>, vector<16x78xf32>,
    %c0_62 = arith.constant 0 : index
    %c12_63 = arith.constant 12 : index
    %51 = vector.load %arg10[%c0_62, %c12_63] : memref<16x100xf32, #tpu.memory_space<vmem>>, vector<16x78xf32>
    %c80 = arith.constant 80 : index
    %c0_64 = arith.constant 0 : index
    %52 = vector.load %arg9[%c80, %c0_64] : memref<144x78xf32, #tpu.memory_space<vmem>>, vector<16x78xf32>
    tpu.vector_store %arg9[%c80, %c0_64], %51 {strides = array<i32>} : memref<144x78xf32, #tpu.memory_space<vmem>>, vector<16x78xf32>,
    %c0_65 = arith.constant 0 : index
    %c20_66 = arith.constant 20 : index
    %53 = vector.load %arg10[%c0_65, %c20_66] : memref<16x100xf32, #tpu.memory_space<vmem>>, vector<16x78xf32>
    %c96 = arith.constant 96 : index
    %c0_67 = arith.constant 0 : index
    %54 = vector.load %arg9[%c96, %c0_67] : memref<144x78xf32, #tpu.memory_space<vmem>>, vector<16x78xf32>
    tpu.vector_store %arg9[%c96, %c0_67], %53 {strides = array<i32>} : memref<144x78xf32, #tpu.memory_space<vmem>>, vector<16x78xf32>,
    %c0_68 = arith.constant 0 : index
    %c21_69 = arith.constant 21 : index
    %55 = vector.load %arg10[%c0_68, %c21_69] : memref<16x100xf32, #tpu.memory_space<vmem>>, vector<16x78xf32>
    %c112 = arith.constant 112 : index
    %c0_70 = arith.constant 0 : index
    %56 = vector.load %arg9[%c112, %c0_70] : memref<144x78xf32, #tpu.memory_space<vmem>>, vector<16x78xf32>
    tpu.vector_store %arg9[%c112, %c0_70], %55 {strides = array<i32>} : memref<144x78xf32, #tpu.memory_space<vmem>>, vector<16x78xf32>,
    %c0_71 = arith.constant 0 : index
    %c22_72 = arith.constant 22 : index
    %57 = vector.load %arg10[%c0_71, %c22_72] : memref<16x100xf32, #tpu.memory_space<vmem>>, vector<16x78xf32>
    %c128 = arith.constant 128 : index
    %c0_73 = arith.constant 0 : index
    %58 = vector.load %arg9[%c128, %c0_73] : memref<144x78xf32, #tpu.memory_space<vmem>>, vector<16x78xf32>
    tpu.vector_store %arg9[%c128, %c0_73], %57 {strides = array<i32>} : memref<144x78xf32, #tpu.memory_space<vmem>>, vector<16x78xf32>,
    %c0_74 = arith.constant 0 : index
    %c0_75 = arith.constant 0 : index
    %59 = vector.load %arg4[%c0_74, %c0_75] : memref<16x144xf32, #tpu.memory_space<vmem>>, vector<16x144xf32>
    %c0_76 = arith.constant 0 : index
    %c0_77 = arith.constant 0 : index
    %60 = vector.load %arg9[%c0_76, %c0_77] : memref<144x78xf32, #tpu.memory_space<vmem>>, vector<144x78xf32>
    %cst_78 = arith.constant dense<0.000000e+00> : vector<16x78xf32>
    %61 = tpu.matmul %59, %60, %cst_78 {dimension_numbers = #tpu.dot_dimension_numbers<[1], [0], [0], [1], [0, 0, 1, 1], [], []>} : vector<16x144xf32>, vector<144x78xf32>, vector<16x78xf32> -> vector<16x78xf32>
    %c0_79 = arith.constant 0 : index
    %c0_80 = arith.constant 0 : index
    %62 = vector.load %arg5[%c0_79, %c0_80] : memref<16x1xf32, #tpu.memory_space<vmem>>, vector<16x1xf32>
    %63 = vector.broadcast %62 : vector<16x1xf32> to vector<16x78xf32>
    %64 = arith.addf %61, %63 : vector<16x78xf32>
    %cst_81 = arith.constant 0.000000e+00 : f32
    %65 = vector.broadcast %cst_81 : f32 to vector<16x78xf32>
    %66 = arith.maximumf %64, %65 : vector<16x78xf32>
    %c0_82 = arith.constant 0 : index
    %c0_83 = arith.constant 0 : index
    %c0_84 = arith.constant 0 : index
    %67 = vector.load %arg7[%c0_82, %c0_83, %c0_84] : memref<2x16x78xf32, #tpu.memory_space<vmem>>, vector<1x16x78xf32>
    %68 = vector.shape_cast %67 : vector<1x16x78xf32> to vector<16x78xf32>
    %69 = vector.shape_cast %66 : vector<16x78xf32> to vector<1x16x78xf32>
    tpu.vector_store %arg7[%c0_82, %c0_83, %c0_84], %69 {strides = array<i32>} : memref<2x16x78xf32, #tpu.memory_space<vmem>>, vector<1x16x78xf32>,
    %c1_85 = arith.constant 1 : index
    %c0_86 = arith.constant 0 : index
    %c0_87 = arith.constant 0 : index
    %70 = vector.load %arg1[%c1_85, %c0_86, %c0_87] : memref<2x8x100xf32, #tpu.memory_space<vmem>>, vector<1x8x78xf32>
    %71 = vector.shape_cast %70 : vector<1x8x78xf32> to vector<8x78xf32>
    %c0_88 = arith.constant 0 : index
    %c0_89 = arith.constant 0 : index
    %72 = vector.load %arg8[%c0_88, %c0_89] : memref<72x78xf32, #tpu.memory_space<vmem>>, vector<8x78xf32>
    tpu.vector_store %arg8[%c0_88, %c0_89], %71 {strides = array<i32>} : memref<72x78xf32, #tpu.memory_space<vmem>>, vector<8x78xf32>,
    %c1_90 = arith.constant 1 : index
    %c0_91 = arith.constant 0 : index
    %c1_92 = arith.constant 1 : index
    %73 = vector.load %arg1[%c1_90, %c0_91, %c1_92] : memref<2x8x100xf32, #tpu.memory_space<vmem>>, vector<1x8x78xf32>
    %74 = vector.shape_cast %73 : vector<1x8x78xf32> to vector<8x78xf32>
    %c8_93 = arith.constant 8 : index
    %c0_94 = arith.constant 0 : index
    %75 = vector.load %arg8[%c8_93, %c0_94] : memref<72x78xf32, #tpu.memory_space<vmem>>, vector<8x78xf32>
    tpu.vector_store %arg8[%c8_93, %c0_94], %74 {strides = array<i32>} : memref<72x78xf32, #tpu.memory_space<vmem>>, vector<8x78xf32>,
    %c1_95 = arith.constant 1 : index
    %c0_96 = arith.constant 0 : index
    %c2_97 = arith.constant 2 : index
    %76 = vector.load %arg1[%c1_95, %c0_96, %c2_97] : memref<2x8x100xf32, #tpu.memory_space<vmem>>, vector<1x8x78xf32>
    %77 = vector.shape_cast %76 : vector<1x8x78xf32> to vector<8x78xf32>
    %c16_98 = arith.constant 16 : index
    %c0_99 = arith.constant 0 : index
    %78 = vector.load %arg8[%c16_98, %c0_99] : memref<72x78xf32, #tpu.memory_space<vmem>>, vector<8x78xf32>
    tpu.vector_store %arg8[%c16_98, %c0_99], %77 {strides = array<i32>} : memref<72x78xf32, #tpu.memory_space<vmem>>, vector<8x78xf32>,
    %c1_100 = arith.constant 1 : index
    %c0_101 = arith.constant 0 : index
    %c10_102 = arith.constant 10 : index
    %79 = vector.load %arg1[%c1_100, %c0_101, %c10_102] : memref<2x8x100xf32, #tpu.memory_space<vmem>>, vector<1x8x78xf32>
    %80 = vector.shape_cast %79 : vector<1x8x78xf32> to vector<8x78xf32>
    %c24_103 = arith.constant 24 : index
    %c0_104 = arith.constant 0 : index
    %81 = vector.load %arg8[%c24_103, %c0_104] : memref<72x78xf32, #tpu.memory_space<vmem>>, vector<8x78xf32>
    tpu.vector_store %arg8[%c24_103, %c0_104], %80 {strides = array<i32>} : memref<72x78xf32, #tpu.memory_space<vmem>>, vector<8x78xf32>,
    %c1_105 = arith.constant 1 : index
    %c0_106 = arith.constant 0 : index
    %c11_107 = arith.constant 11 : index
    %82 = vector.load %arg1[%c1_105, %c0_106, %c11_107] : memref<2x8x100xf32, #tpu.memory_space<vmem>>, vector<1x8x78xf32>
    %83 = vector.shape_cast %82 : vector<1x8x78xf32> to vector<8x78xf32>
    %c32_108 = arith.constant 32 : index
    %c0_109 = arith.constant 0 : index
    %84 = vector.load %arg8[%c32_108, %c0_109] : memref<72x78xf32, #tpu.memory_space<vmem>>, vector<8x78xf32>
    tpu.vector_store %arg8[%c32_108, %c0_109], %83 {strides = array<i32>} : memref<72x78xf32, #tpu.memory_space<vmem>>, vector<8x78xf32>,
    %c1_110 = arith.constant 1 : index
    %c0_111 = arith.constant 0 : index
    %c12_112 = arith.constant 12 : index
    %85 = vector.load %arg1[%c1_110, %c0_111, %c12_112] : memref<2x8x100xf32, #tpu.memory_space<vmem>>, vector<1x8x78xf32>
    %86 = vector.shape_cast %85 : vector<1x8x78xf32> to vector<8x78xf32>
    %c40_113 = arith.constant 40 : index
    %c0_114 = arith.constant 0 : index
    %87 = vector.load %arg8[%c40_113, %c0_114] : memref<72x78xf32, #tpu.memory_space<vmem>>, vector<8x78xf32>
    tpu.vector_store %arg8[%c40_113, %c0_114], %86 {strides = array<i32>} : memref<72x78xf32, #tpu.memory_space<vmem>>, vector<8x78xf32>,
    %c1_115 = arith.constant 1 : index
    %c0_116 = arith.constant 0 : index
    %c20_117 = arith.constant 20 : index
    %88 = vector.load %arg1[%c1_115, %c0_116, %c20_117] : memref<2x8x100xf32, #tpu.memory_space<vmem>>, vector<1x8x78xf32>
    %89 = vector.shape_cast %88 : vector<1x8x78xf32> to vector<8x78xf32>
    %c48_118 = arith.constant 48 : index
    %c0_119 = arith.constant 0 : index
    %90 = vector.load %arg8[%c48_118, %c0_119] : memref<72x78xf32, #tpu.memory_space<vmem>>, vector<8x78xf32>
    tpu.vector_store %arg8[%c48_118, %c0_119], %89 {strides = array<i32>} : memref<72x78xf32, #tpu.memory_space<vmem>>, vector<8x78xf32>,
    %c1_120 = arith.constant 1 : index
    %c0_121 = arith.constant 0 : index
    %c21_122 = arith.constant 21 : index
    %91 = vector.load %arg1[%c1_120, %c0_121, %c21_122] : memref<2x8x100xf32, #tpu.memory_space<vmem>>, vector<1x8x78xf32>
    %92 = vector.shape_cast %91 : vector<1x8x78xf32> to vector<8x78xf32>
    %c56_123 = arith.constant 56 : index
    %c0_124 = arith.constant 0 : index
    %93 = vector.load %arg8[%c56_123, %c0_124] : memref<72x78xf32, #tpu.memory_space<vmem>>, vector<8x78xf32>
    tpu.vector_store %arg8[%c56_123, %c0_124], %92 {strides = array<i32>} : memref<72x78xf32, #tpu.memory_space<vmem>>, vector<8x78xf32>,
    %c1_125 = arith.constant 1 : index
    %c0_126 = arith.constant 0 : index
    %c22_127 = arith.constant 22 : index
    %94 = vector.load %arg1[%c1_125, %c0_126, %c22_127] : memref<2x8x100xf32, #tpu.memory_space<vmem>>, vector<1x8x78xf32>
    %95 = vector.shape_cast %94 : vector<1x8x78xf32> to vector<8x78xf32>
    %c64_128 = arith.constant 64 : index
    %c0_129 = arith.constant 0 : index
    %96 = vector.load %arg8[%c64_128, %c0_129] : memref<72x78xf32, #tpu.memory_space<vmem>>, vector<8x78xf32>
    tpu.vector_store %arg8[%c64_128, %c0_129], %95 {strides = array<i32>} : memref<72x78xf32, #tpu.memory_space<vmem>>, vector<8x78xf32>,
    %c0_130 = arith.constant 0 : index
    %c0_131 = arith.constant 0 : index
    %97 = vector.load %arg2[%c0_130, %c0_131] : memref<16x72xf32, #tpu.memory_space<vmem>>, vector<16x72xf32>
    %c0_132 = arith.constant 0 : index
    %c0_133 = arith.constant 0 : index
    %98 = vector.load %arg8[%c0_132, %c0_133] : memref<72x78xf32, #tpu.memory_space<vmem>>, vector<72x78xf32>
    %cst_134 = arith.constant dense<0.000000e+00> : vector<16x78xf32>
    %99 = tpu.matmul %97, %98, %cst_134 {dimension_numbers = #tpu.dot_dimension_numbers<[1], [0], [0], [1], [0, 0, 1, 1], [], []>} : vector<16x72xf32>, vector<72x78xf32>, vector<16x78xf32> -> vector<16x78xf32>
    %c0_135 = arith.constant 0 : index
    %c0_136 = arith.constant 0 : index
    %100 = vector.load %arg3[%c0_135, %c0_136] : memref<16x1xf32, #tpu.memory_space<vmem>>, vector<16x1xf32>
    %101 = vector.broadcast %100 : vector<16x1xf32> to vector<16x78xf32>
    %102 = arith.addf %99, %101 : vector<16x78xf32>
    %cst_137 = arith.constant 0.000000e+00 : f32
    %103 = vector.broadcast %cst_137 : f32 to vector<16x78xf32>
    %104 = arith.maximumf %102, %103 : vector<16x78xf32>
    %105 = vector.broadcast %0 : vector<1x78xf32> to vector<16x78xf32>
    %106 = arith.mulf %104, %105 : vector<16x78xf32>
    %c0_138 = arith.constant 0 : index
    %c11_139 = arith.constant 11 : index
    %107 = vector.load %arg10[%c0_138, %c11_139] : memref<16x100xf32, #tpu.memory_space<vmem>>, vector<16x78xf32>
    tpu.vector_store %arg10[%c0_138, %c11_139], %106 {strides = array<i32>} : memref<16x100xf32, #tpu.memory_space<vmem>>, vector<16x78xf32>,
    %c0_140 = arith.constant 0 : index
    %c0_141 = arith.constant 0 : index
    %108 = vector.load %arg10[%c0_140, %c0_141] : memref<16x100xf32, #tpu.memory_space<vmem>>, vector<16x78xf32>
    %c0_142 = arith.constant 0 : index
    %c0_143 = arith.constant 0 : index
    %109 = vector.load %arg9[%c0_142, %c0_143] : memref<144x78xf32, #tpu.memory_space<vmem>>, vector<16x78xf32>
    tpu.vector_store %arg9[%c0_142, %c0_143], %108 {strides = array<i32>} : memref<144x78xf32, #tpu.memory_space<vmem>>, vector<16x78xf32>,
    %c0_144 = arith.constant 0 : index
    %c1_145 = arith.constant 1 : index
    %110 = vector.load %arg10[%c0_144, %c1_145] : memref<16x100xf32, #tpu.memory_space<vmem>>, vector<16x78xf32>
    %c16_146 = arith.constant 16 : index
    %c0_147 = arith.constant 0 : index
    %111 = vector.load %arg9[%c16_146, %c0_147] : memref<144x78xf32, #tpu.memory_space<vmem>>, vector<16x78xf32>
    tpu.vector_store %arg9[%c16_146, %c0_147], %110 {strides = array<i32>} : memref<144x78xf32, #tpu.memory_space<vmem>>, vector<16x78xf32>,
    %c0_148 = arith.constant 0 : index
    %c2_149 = arith.constant 2 : index
    %112 = vector.load %arg10[%c0_148, %c2_149] : memref<16x100xf32, #tpu.memory_space<vmem>>, vector<16x78xf32>
    %c32_150 = arith.constant 32 : index
    %c0_151 = arith.constant 0 : index
    %113 = vector.load %arg9[%c32_150, %c0_151] : memref<144x78xf32, #tpu.memory_space<vmem>>, vector<16x78xf32>
    tpu.vector_store %arg9[%c32_150, %c0_151], %112 {strides = array<i32>} : memref<144x78xf32, #tpu.memory_space<vmem>>, vector<16x78xf32>,
    %c0_152 = arith.constant 0 : index
    %c10_153 = arith.constant 10 : index
    %114 = vector.load %arg10[%c0_152, %c10_153] : memref<16x100xf32, #tpu.memory_space<vmem>>, vector<16x78xf32>
    %c48_154 = arith.constant 48 : index
    %c0_155 = arith.constant 0 : index
    %115 = vector.load %arg9[%c48_154, %c0_155] : memref<144x78xf32, #tpu.memory_space<vmem>>, vector<16x78xf32>
    tpu.vector_store %arg9[%c48_154, %c0_155], %114 {strides = array<i32>} : memref<144x78xf32, #tpu.memory_space<vmem>>, vector<16x78xf32>,
    %c0_156 = arith.constant 0 : index
    %c11_157 = arith.constant 11 : index
    %116 = vector.load %arg10[%c0_156, %c11_157] : memref<16x100xf32, #tpu.memory_space<vmem>>, vector<16x78xf32>
    %c64_158 = arith.constant 64 : index
    %c0_159 = arith.constant 0 : index
    %117 = vector.load %arg9[%c64_158, %c0_159] : memref<144x78xf32, #tpu.memory_space<vmem>>, vector<16x78xf32>
    tpu.vector_store %arg9[%c64_158, %c0_159], %116 {strides = array<i32>} : memref<144x78xf32, #tpu.memory_space<vmem>>, vector<16x78xf32>,
    %c0_160 = arith.constant 0 : index
    %c12_161 = arith.constant 12 : index
    %118 = vector.load %arg10[%c0_160, %c12_161] : memref<16x100xf32, #tpu.memory_space<vmem>>, vector<16x78xf32>
    %c80_162 = arith.constant 80 : index
    %c0_163 = arith.constant 0 : index
    %119 = vector.load %arg9[%c80_162, %c0_163] : memref<144x78xf32, #tpu.memory_space<vmem>>, vector<16x78xf32>
    tpu.vector_store %arg9[%c80_162, %c0_163], %118 {strides = array<i32>} : memref<144x78xf32, #tpu.memory_space<vmem>>, vector<16x78xf32>,
    %c0_164 = arith.constant 0 : index
    %c20_165 = arith.constant 20 : index
    %120 = vector.load %arg10[%c0_164, %c20_165] : memref<16x100xf32, #tpu.memory_space<vmem>>, vector<16x78xf32>
    %c96_166 = arith.constant 96 : index
    %c0_167 = arith.constant 0 : index
    %121 = vector.load %arg9[%c96_166, %c0_167] : memref<144x78xf32, #tpu.memory_space<vmem>>, vector<16x78xf32>
    tpu.vector_store %arg9[%c96_166, %c0_167], %120 {strides = array<i32>} : memref<144x78xf32, #tpu.memory_space<vmem>>, vector<16x78xf32>,
    %c0_168 = arith.constant 0 : index
    %c21_169 = arith.constant 21 : index
    %122 = vector.load %arg10[%c0_168, %c21_169] : memref<16x100xf32, #tpu.memory_space<vmem>>, vector<16x78xf32>
    %c112_170 = arith.constant 112 : index
    %c0_171 = arith.constant 0 : index
    %123 = vector.load %arg9[%c112_170, %c0_171] : memref<144x78xf32, #tpu.memory_space<vmem>>, vector<16x78xf32>
    tpu.vector_store %arg9[%c112_170, %c0_171], %122 {strides = array<i32>} : memref<144x78xf32, #tpu.memory_space<vmem>>, vector<16x78xf32>,
    %c0_172 = arith.constant 0 : index
    %c22_173 = arith.constant 22 : index
    %124 = vector.load %arg10[%c0_172, %c22_173] : memref<16x100xf32, #tpu.memory_space<vmem>>, vector<16x78xf32>
    %c128_174 = arith.constant 128 : index
    %c0_175 = arith.constant 0 : index
    %125 = vector.load %arg9[%c128_174, %c0_175] : memref<144x78xf32, #tpu.memory_space<vmem>>, vector<16x78xf32>
    tpu.vector_store %arg9[%c128_174, %c0_175], %124 {strides = array<i32>} : memref<144x78xf32, #tpu.memory_space<vmem>>, vector<16x78xf32>,
    %c0_176 = arith.constant 0 : index
    %c0_177 = arith.constant 0 : index
    %126 = vector.load %arg4[%c0_176, %c0_177] : memref<16x144xf32, #tpu.memory_space<vmem>>, vector<16x144xf32>
    %c0_178 = arith.constant 0 : index
    %c0_179 = arith.constant 0 : index
    %127 = vector.load %arg9[%c0_178, %c0_179] : memref<144x78xf32, #tpu.memory_space<vmem>>, vector<144x78xf32>
    %cst_180 = arith.constant dense<0.000000e+00> : vector<16x78xf32>
    %128 = tpu.matmul %126, %127, %cst_180 {dimension_numbers = #tpu.dot_dimension_numbers<[1], [0], [0], [1], [0, 0, 1, 1], [], []>} : vector<16x144xf32>, vector<144x78xf32>, vector<16x78xf32> -> vector<16x78xf32>
    %c0_181 = arith.constant 0 : index
    %c0_182 = arith.constant 0 : index
    %129 = vector.load %arg5[%c0_181, %c0_182] : memref<16x1xf32, #tpu.memory_space<vmem>>, vector<16x1xf32>
    %130 = vector.broadcast %129 : vector<16x1xf32> to vector<16x78xf32>
    %131 = arith.addf %128, %130 : vector<16x78xf32>
    %cst_183 = arith.constant 0.000000e+00 : f32
    %132 = vector.broadcast %cst_183 : f32 to vector<16x78xf32>
    %133 = arith.maximumf %131, %132 : vector<16x78xf32>
    %c1_184 = arith.constant 1 : index
    %c0_185 = arith.constant 0 : index
    %c0_186 = arith.constant 0 : index
    %134 = vector.load %arg7[%c1_184, %c0_185, %c0_186] : memref<2x16x78xf32, #tpu.memory_space<vmem>>, vector<1x16x78xf32>
    %135 = vector.shape_cast %134 : vector<1x16x78xf32> to vector<16x78xf32>
    %136 = vector.shape_cast %133 : vector<16x78xf32> to vector<1x16x78xf32>
    tpu.vector_store %arg7[%c1_184, %c0_185, %c0_186], %136 {strides = array<i32>} : memref<2x16x78xf32, #tpu.memory_space<vmem>>, vector<1x16x78xf32>,
    return
  }
  func.func @transform_0(%arg0: i32) -> (i32, i32, i32) {
    %c0_i32 = arith.constant 0 : i32
    %c0_i32_0 = arith.constant 0 : i32
    %c0_i32_1 = arith.constant 0 : i32
    %c0_i32_2 = arith.constant 0 : i32
    return %c0_i32, %c0_i32_0, %c0_i32_1 : i32, i32, i32
  }
  func.func @transform_1(%arg0: i32) -> (i32, i32) {
    %c0_i32 = arith.constant 0 : i32
    %c0_i32_0 = arith.constant 0 : i32
    %c0_i32_1 = arith.constant 0 : i32
    return %c0_i32, %c0_i32_0 : i32, i32
  }
  func.func @transform_2(%arg0: i32) -> (i32, i32) {
    %c0_i32 = arith.constant 0 : i32
    %c0_i32_0 = arith.constant 0 : i32
    %c0_i32_1 = arith.constant 0 : i32
    return %c0_i32, %c0_i32_0 : i32, i32
  }
  func.func @transform_3(%arg0: i32) -> (i32, i32) {
    %c0_i32 = arith.constant 0 : i32
    %c0_i32_0 = arith.constant 0 : i32
    %c0_i32_1 = arith.constant 0 : i32
    return %c0_i32, %c0_i32_0 : i32, i32
  }
  func.func @transform_4(%arg0: i32) -> (i32, i32) {
    %c0_i32 = arith.constant 0 : i32
    %c0_i32_0 = arith.constant 0 : i32
    %c0_i32_1 = arith.constant 0 : i32
    return %c0_i32, %c0_i32_0 : i32, i32
  }
  func.func @transform_5(%arg0: i32) -> (i32, i32) {
    %c0_i32 = arith.constant 0 : i32
    %c0_i32_0 = arith.constant 0 : i32
    %c0_i32_1 = arith.constant 0 : i32
    return %c0_i32, %c0_i32_0 : i32, i32
  }
  func.func @transform_6(%arg0: i32) -> (i32, i32, i32) {
    %c0_i32 = arith.constant 0 : i32
    %c0_i32_0 = arith.constant 0 : i32
    %c0_i32_1 = arith.constant 0 : i32
    %c0_i32_2 = arith.constant 0 : i32
    return %c0_i32, %c0_i32_0, %c0_i32_1 : i32, i32, i32
  }
}

</mosaic_0001>

<bundles_post_ra>
// kernel: encoder_forward.3
= control target key start
LH: loop header
LB: loop body
LE: loop exit
PB: predicated region body
PF: predicated region fallthrough
CT: control target
= control target key end

     0   :  { %vm28_vm0 = vcmask 637952   ;;  %s914_s23 = smov 106   ;;  %s915_s24 = smov 108   ;;  %vm101_vm1 = vcmask 588800   ;;  %v922_v4 = vmov 0   ;;  %vm24_vm2 = vcmask 818176   ;;  %s1173_s0 = inlined_call_operand.vmem [shape: f32[2,8,100], index: 0, kind: input, shape index: {}]   ;;  %s1174_s1 = inlined_call_operand.vmem [shape: f32[16,72], index: 1, kind: input, shape index: {}]   ;;  %s1175_s2 = inlined_call_operand.vmem [shape: f32[16,1], index: 2, kind: input, shape index: {}]   ;;  %s1176_s5 = inlined_call_operand.vmem [shape: f32[1,78], index: 5, kind: input, shape index: {}]   ;;  %s1177_s3 = inlined_call_operand.vmem [shape: f32[16,144], index: 3, kind: input, shape index: {}]   ;;  %s1178_s4 = inlined_call_operand.vmem [shape: f32[16,1], index: 4, kind: input, shape index: {}]   ;;  %s1179_s6 = inlined_call_operand.vmem [shape: f32[2,16,78], index: 6, kind: output, shape index: {}]  }
   0x1   :  { %v72_v0 = vld [vmem:[%s1173_s0] sm:$0xff]  ;;  %s916_s25 = smov 107   ;;  %s917_s26 = smov 116   ;;  %v830_v1 = vld [vmem:[%s1173_s0 + $0x8] sm:$0xff]  ;;  %913 = vset.pattern.permute.xlu1 %v922_v4  ;;  %912 = vset.pattern.permute.xlu0 %v922_v4  ;;  %v923_v41 = vmov 0.0   ;;  %vm201_vm3 = vcmask 728152  }
   0x2   :  { %74 = vrot.lane.b32.xlu0 %v72_v0, %s914_s23  ;;  %62 = vrot.lane.b32.xlu1 %v72_v0, %s915_s24  ;;  %29 = vst.msk [vmem:[#allocation2] sm:$0xff] %vm28_vm0, %v72_v0  ;;  %s918_s29 = smov 117   ;;  %s919_s30 = smov 118   ;;  %v78_v3 = vld [vmem:[%s1174_s1] sm:$0xff]  ;;  %v90_v6 = vld [vmem:[%s1175_s2 + $0x8] sm:$0xff]  ;;  %vm338_vm4 = vcmask 130048  }
   0x3   :  { %s920_s7 = smov 126   ;;  %877 = vmatprep.mubr.msk.f32.mxu1 %vm101_vm1, %v78_v3  ;;  %898 = vmatprep.mubr.msk.f32.mxu0 %vm101_vm1, %v78_v3  ;;  %s921_s9 = smov 127   ;;  %v89_v5 = vld [vmem:[%s1175_s2] sm:$0xff]  ;;  %v79_v35 = vld [vmem:[%s1174_s1 + $0x8] sm:$0xff]  ;;  %26 = vst.msk [vmem:[#allocation4 + $0x8] sm:$0xff] %vm24_vm2, %v923_v41  ;;  %25 = vst.msk [vmem:[#allocation4] sm:$0xff] %vm24_vm2, %v923_v41 }
   0x4   :  { %v819_v46 = vld [vmem:[%s1176_s5] ss:$0 sm:$0xff]  ;;  %s924_s16 = smov 11  }
   0x6   :  { %68 = vrot.lane.b32.xlu0 %v72_v0, %s916_s25  ;;  %56 = vrot.lane.b32.xlu1 %v72_v0, %s917_s26 }
   0x9   :  { %v977_v2 = vld [vmem:[#allocation2] sm:$0xff] }
   0xa   :  { %50 = vrot.lane.b32.xlu0 %v72_v0, %s918_s29  ;;  %471 = vrot.lane.b32.xlu1 %v830_v1, %s914_s23  ;;  %426 = vst.msk [vmem:[#allocation2] sm:$0xff] %vm28_vm0, %v830_v1 }
   0xe   :  { %44 = vrot.lane.b32.xlu0 %v72_v0, %s919_s30  ;;  %465 = vrot.lane.b32.xlu1 %v830_v1, %s916_s25 }
  0x11   :  { %v477_v40 = vld [vmem:[#allocation2] sm:$0xff] }
  0x12   :  { %38 = vrot.lane.b32.xlu0 %v72_v0, %s920_s7  ;;  %459 = vrot.lane.b32.xlu1 %v830_v1, %s915_s24 }
  0x16   :  { %32 = vrot.lane.b32.xlu0 %v72_v0, %s921_s9  ;;  %453 = vrot.lane.b32.xlu1 %v830_v1, %s917_s26 }
  0x1a   :  { %447 = vrot.lane.b32.xlu0 %v830_v1, %s918_s29  ;;  %441 = vrot.lane.b32.xlu1 %v830_v1, %s919_s30 }
  0x1e   :  { %435 = vrot.lane.b32.xlu0 %v830_v1, %s920_s7  ;;  %429 = vrot.lane.b32.xlu1 %v830_v1, %s921_s9 }
  0x22   :  { %93 = vperm.xlu1 %913, %v89_v5   ;;  %98 = vperm.xlu0 %912, %v90_v6  }
  0x26   :  { %495 = vperm.xlu1 %913, %v90_v6   ;;  %490 = vperm.xlu0 %912, %v89_v5  }
  0x74   :  { %v75_v7 = vpop.permute.xlu0 %74  ;;  %v63_v8 = vpop.permute.xlu1 %62 }
  0x75   :  { %77 = vst.msk [vmem:[#allocation2 + $0x40] sm:$0xff] %vm28_vm0, %v75_v7  ;;  %65 = vst.msk [vmem:[#allocation2 + $0x30] sm:$0xff] %vm28_vm0, %v63_v8 }
  0x78   :  { %v69_v9 = vpop.permute.xlu0 %68  ;;  %v57_v10 = vpop.permute.xlu1 %56 }
  0x79   :  { %71 = vst.msk [vmem:[#allocation2 + $0x38] sm:$0xff] %vm28_vm0, %v69_v9  ;;  %59 = vst.msk [vmem:[#allocation2 + $0x28] sm:$0xff] %vm28_vm0, %v57_v10  ;;  %v305_v9 = vld [vmem:[%s1177_s3 + $0x8] sm:$0xff]  ;;  %v326_v10 = vld [vmem:[%s1178_s4] sm:$0xff] }
  0x7c   :  { %v51_v11 = vpop.permute.xlu0 %50  ;;  %v88_v12 = vld [vmem:[#allocation2 + $0x40] sm:$0xff]  ;;  %v472_v13 = vpop.permute.xlu1 %471  ;;  %v86_v17 = vld [vmem:[#allocation2 + $0x30] sm:$0xff] }
  0x7d   :  { %53 = vst.msk [vmem:[#allocation2 + $0x20] sm:$0xff] %vm28_vm0, %v51_v11  ;;  %859 = vmatprep.subr.mxu1 %v88_v12  ;;  %474 = vst.msk [vmem:[#allocation2 + $0x40] sm:$0xff] %vm28_vm0, %v472_v13  ;;  %v327_v11 = vld [vmem:[%s1178_s4 + $0x8] sm:$0xff] }
  0x7e   :  { %860 = vmatpush3.msra.mxu1 %v88_v12 }
  0x80   :  { %v45_v14 = vpop.permute.xlu0 %44  ;;  %v87_v15 = vld [vmem:[#allocation2 + $0x38] sm:$0xff]  ;;  %v466_v16 = vpop.permute.xlu1 %465  ;;  %v85_v19 = vld [vmem:[#allocation2 + $0x28] sm:$0xff] }
  0x81   :  { %47 = vst.msk [vmem:[#allocation2 + $0x18] sm:$0xff] %vm28_vm0, %v45_v14  ;;  %861 = vmatprep.subr.mxu1 %v87_v15  ;;  %468 = vst.msk [vmem:[#allocation2 + $0x38] sm:$0xff] %vm28_vm0, %v466_v16 }
  0x82   :  { %862 = vmatpush3.msra.mxu1 %v87_v15 }
  0x83   :  { %863 = vmatprep.subr.mxu1 %v86_v17 }
  0x84   :  { %864 = vmatpush3.msra.mxu1 %v86_v17  ;;  %v39_v18 = vpop.permute.xlu0 %38  ;;  %v460_v20 = vpop.permute.xlu1 %459  ;;  %v485_v21 = vld [vmem:[#allocation2 + $0x40] sm:$0xff] }
  0x85   :  { %41 = vst.msk [vmem:[#allocation2 + $0x10] sm:$0xff] %vm28_vm0, %v39_v18  ;;  %865 = vmatprep.subr.mxu1 %v85_v19  ;;  %462 = vst.msk [vmem:[#allocation2 + $0x30] sm:$0xff] %vm28_vm0, %v460_v20  ;;  %880 = vmatprep.subr.mxu0 %v485_v21  ;;  %v84_v22 = vld [vmem:[#allocation2 + $0x20] sm:$0xff] }
  0x86   :  { %866 = vmatpush3.msra.mxu1 %v85_v19  ;;  %881 = vmatpush3.msra.mxu0 %v485_v21 }
  0x87   :  { %867 = vmatprep.subr.mxu1 %v84_v22 }
  0x88   :  { %868 = vmatpush3.msra.mxu1 %v84_v22  ;;  %v33_v23 = vpop.permute.xlu0 %32  ;;  %v454_v24 = vpop.permute.xlu1 %453  ;;  %v83_v25 = vld [vmem:[#allocation2 + $0x18] sm:$0xff] }
  0x89   :  { %v484_v26 = vld [vmem:[#allocation2 + $0x38] sm:$0xff]  ;;  %35 = vst.msk [vmem:[#allocation2 + $0x8] sm:$0xff] %vm28_vm0, %v33_v23  ;;  %456 = vst.msk [vmem:[#allocation2 + $0x28] sm:$0xff] %vm28_vm0, %v454_v24  ;;  %869 = vmatprep.subr.mxu1 %v83_v25 }
  0x8a   :  { %882 = vmatprep.subr.mxu0 %v484_v26  ;;  %870 = vmatpush3.msra.mxu1 %v83_v25 }
  0x8b   :  { %883 = vmatpush3.msra.mxu0 %v484_v26 }
  0x8c   :  { %v448_v27 = vpop.permute.xlu0 %447  ;;  %v82_v28 = vld [vmem:[#allocation2 + $0x10] sm:$0xff]  ;;  %v442_v30 = vpop.permute.xlu1 %441 }
  0x8d   :  { %v483_v29 = vld [vmem:[#allocation2 + $0x30] sm:$0xff]  ;;  %450 = vst.msk [vmem:[#allocation2 + $0x20] sm:$0xff] %vm28_vm0, %v448_v27  ;;  %871 = vmatprep.subr.mxu1 %v82_v28  ;;  %444 = vst.msk [vmem:[#allocation2 + $0x18] sm:$0xff] %vm28_vm0, %v442_v30 }
  0x8e   :  { %884 = vmatprep.subr.mxu0 %v483_v29  ;;  %872 = vmatpush3.msra.mxu1 %v82_v28 }
  0x8f   :  { %885 = vmatpush3.msra.mxu0 %v483_v29 }
  0x90   :  { %v436_v31 = vpop.permute.xlu0 %435  ;;  %v81_v32 = vld [vmem:[#allocation2 + $0x8] sm:$0xff]  ;;  %v430_v34 = vpop.permute.xlu1 %429 }
  0x91   :  { %v482_v33 = vld [vmem:[#allocation2 + $0x28] sm:$0xff]  ;;  %438 = vst.msk [vmem:[#allocation2 + $0x10] sm:$0xff] %vm28_vm0, %v436_v31  ;;  %873 = vmatprep.subr.mxu1 %v81_v32  ;;  %432 = vst.msk [vmem:[#allocation2 + $0x8] sm:$0xff] %vm28_vm0, %v430_v34 }
  0x92   :  { %886 = vmatprep.subr.mxu0 %v482_v33  ;;  %874 = vmatpush3.msra.mxu1 %v81_v32 }
  0x93   :  { %887 = vmatpush3.msra.mxu0 %v482_v33  ;;  %875 = vmatprep.subr.mxu1 %v977_v2 }
  0x94   :  { %876 = vmatpush3.msra.mxu1 %v977_v2  ;;  %v481_v36 = vld [vmem:[#allocation2 + $0x20] sm:$0xff]  ;;  %v480_v37 = vld [vmem:[#allocation2 + $0x18] sm:$0xff] }
  0x95   :  { %878 = vmatmul.mubr.msk.f32.vlgmr.msra.gmra.mxu1 %vm101_vm1, %v79_v35  ;;  %888 = vmatprep.subr.mxu0 %v481_v36 }
  0x96   :  { %889 = vmatpush3.msra.mxu0 %v481_v36  ;;  %345 = vmatprep.subr.mxu1 %v923_v41 }
  0x97   :  { %890 = vmatprep.subr.mxu0 %v480_v37  ;;  %820 = vmatprep.mubr.msk.f32.mxu1 %vm338_vm4, %v305_v9 }
  0x98   :  { %891 = vmatpush3.msra.mxu0 %v480_v37  ;;  %v479_v38 = vld [vmem:[#allocation2 + $0x10] sm:$0xff]  ;;  %v478_v39 = vld [vmem:[#allocation2 + $0x8] sm:$0xff] }
  0x99   :  { %892 = vmatprep.subr.mxu0 %v479_v38 }
  0x9a   :  { %893 = vmatpush3.msra.mxu0 %v479_v38 }
  0x9b   :  { %894 = vmatprep.subr.mxu0 %v478_v39 }
  0x9c   :  { %895 = vmatpush3.msra.mxu0 %v478_v39 }
  0x9d   :  { %896 = vmatprep.subr.mxu0 %v477_v40  ;;  %v99_v42 = vpop.permute.xlu0 %98  ;;  %v94_v45 = vpop.permute.xlu1 %93 }
  0x9e   :  { %897 = vmatpush3.msra.mxu0 %v477_v40 }
  0x9f   :  { %899 = vmatmul.mubr.msk.f32.vlgmr.msra.gmra.mxu0 %vm101_vm1, %v79_v35  ;;  %733 = vmatprep.subr.mxu0 %v923_v41 }
  0xa0   :  { %833 = vmatprep.mubr.msk.f32.mxu0 %vm338_vm4, %v305_v9 }
  0xa1   :  { %v496_v53 = vpop.permute.xlu1 %495  ;;  %v491_v56 = vpop.permute.xlu0 %490 }
 0x155   :  { %v879_v43 = vpop.f32.mrf.mxu1 }
 0x156   :  { %v180_v44 = vadd.f32 %v879_v43, %v99_v42 }
 0x157   :  { %v174_v47 = vpop.f32.mrf.mxu1 }
 0x158   :  { %v184_v48 = vmax.f32 %v180_v44, 0.0  ;;  %v175_v49 = vadd.f32 %v174_v47, %v94_v45 }
 0x15a   :  { %v192_v50 = vmul.f32 %v819_v46, %v184_v48  ;;  %v183_v51 = vmax.f32 %v175_v49, 0.0 }
 0x15c   :  { %v191_v52 = vmul.f32 %v819_v46, %v183_v51  ;;  %197 = vrot.lane.b32.xlu1 %v192_v50, %s924_s16 }
 0x15e   :  { %195 = vrot.lane.b32.xlu0 %v191_v52, %s924_s16 }
 0x15f   :  { %v900_v54 = vpop.f32.mrf.mxu0 }
 0x160   :  { %v576_v55 = vadd.f32 %v900_v54, %v496_v53 }
 0x161   :  { %v570_v57 = vpop.f32.mrf.mxu0 }
 0x162   :  { %v580_v58 = vmax.f32 %v576_v55, 0.0  ;;  %v571_v59 = vadd.f32 %v570_v57, %v491_v56 }
 0x164   :  { %v582_v60 = vmul.f32 %v819_v46, %v580_v58  ;;  %v579_v61 = vmax.f32 %v571_v59, 0.0 }
 0x166   :  { %v581_v62 = vmul.f32 %v819_v46, %v579_v61  ;;  %587 = vrot.lane.b32.xlu1 %v582_v60, %s924_s16 }
 0x168   :  { %585 = vrot.lane.b32.xlu0 %v581_v62, %s924_s16 }
 0x1ce   :  { %v198_v63 = vpop.permute.xlu1 %197 }
 0x1cf   :  { %203 = vst.msk [vmem:[#allocation4 + $0x8] sm:$0xff] %vm201_vm3, %v198_v63 }
 0x1d0   :  { %v196_v0 = vpop.permute.xlu0 %195 }
 0x1d1   :  { %202 = vst.msk [vmem:[#allocation4] sm:$0xff] %vm201_vm3, %v196_v0 }
 0x1d6   :  { %v205_v1 = vld [vmem:[#allocation4 + $0x8] sm:$0xff] }
 0x1d7   :  { %207 = vst.msk [vmem:[#allocation3 + $0x8] sm:$0xff] %vm28_vm0, %v205_v1  ;;  %286 = vrot.lane.b32.xlu1 %v205_v1, %s916_s25 }
 0x1d8   :  { %v204_v2 = vld [vmem:[#allocation4] sm:$0xff]  ;;  %v588_v3 = vpop.permute.xlu1 %587 }
 0x1d9   :  { %206 = vst.msk [vmem:[#allocation3] sm:$0xff] %vm28_vm0, %v204_v2  ;;  %284 = vrot.lane.b32.xlu0 %v204_v2, %s916_s25 }
 0x1da   :  { %592 = vst.msk [vmem:[#allocation4 + $0x8] sm:$0xff] %vm201_vm3, %v588_v3  ;;  %v586_v4 = vpop.permute.xlu0 %585 }
 0x1db   :  { %274 = vrot.lane.b32.xlu1 %v205_v1, %s915_s24  ;;  %591 = vst.msk [vmem:[#allocation4] sm:$0xff] %vm201_vm3, %v586_v4 }
 0x1dd   :  { %272 = vrot.lane.b32.xlu0 %v204_v2, %s915_s24 }
 0x1de   :  { %v1034_v6 = vld [vmem:[#allocation3 + $0x8] sm:$0xff] }
 0x1df   :  { %262 = vrot.lane.b32.xlu1 %v205_v1, %s917_s26 }
 0x1e0   :  { %v1038_v8 = vld [vmem:[#allocation3] sm:$0xff] }
 0x1e1   :  { %v670_v5 = vld [vmem:[#allocation4 + $0x8] sm:$0xff] }
 0x1e2   :  { %675 = vrot.lane.b32.xlu0 %v670_v5, %s916_s25  ;;  %596 = vst.msk [vmem:[#allocation3 + $0x8] sm:$0xff] %vm28_vm0, %v670_v5  ;;  %v669_v7 = vld [vmem:[#allocation4] sm:$0xff] }
 0x1e3   :  { %250 = vrot.lane.b32.xlu1 %v205_v1, %s918_s29  ;;  %595 = vst.msk [vmem:[#allocation3] sm:$0xff] %vm28_vm0, %v669_v7 }
 0x1e6   :  { %663 = vrot.lane.b32.xlu0 %v670_v5, %s915_s24 }
 0x1e7   :  { %238 = vrot.lane.b32.xlu1 %v205_v1, %s919_s30 }
 0x1ea   :  { %651 = vrot.lane.b32.xlu0 %v670_v5, %s917_s26 }
 0x1eb   :  { %226 = vrot.lane.b32.xlu1 %v205_v1, %s920_s7 }
 0x1ee   :  { %639 = vrot.lane.b32.xlu0 %v670_v5, %s918_s29 }
 0x1ef   :  { %214 = vrot.lane.b32.xlu1 %v205_v1, %s921_s9 }
 0x1f2   :  { %627 = vrot.lane.b32.xlu0 %v670_v5, %s919_s30 }
 0x1f3   :  { %260 = vrot.lane.b32.xlu1 %v204_v2, %s917_s26 }
 0x1f6   :  { %603 = vrot.lane.b32.xlu0 %v670_v5, %s921_s9 }
 0x1f7   :  { %248 = vrot.lane.b32.xlu1 %v204_v2, %s918_s29 }
 0x1fa   :  { %673 = vrot.lane.b32.xlu0 %v669_v7, %s916_s25 }
 0x1fb   :  { %236 = vrot.lane.b32.xlu1 %v204_v2, %s919_s30 }
 0x1fe   :  { %661 = vrot.lane.b32.xlu0 %v669_v7, %s915_s24 }
 0x1ff   :  { %224 = vrot.lane.b32.xlu1 %v204_v2, %s920_s7 }
 0x202   :  { %649 = vrot.lane.b32.xlu0 %v669_v7, %s917_s26 }
 0x203   :  { %212 = vrot.lane.b32.xlu1 %v204_v2, %s921_s9 }
 0x206   :  { %637 = vrot.lane.b32.xlu0 %v669_v7, %s918_s29 }
 0x207   :  { %615 = vrot.lane.b32.xlu1 %v670_v5, %s920_s7 }
 0x20a   :  { %625 = vrot.lane.b32.xlu0 %v669_v7, %s919_s30 }
 0x20b   :  { %298 = vrot.lane.b32.xlu1 %v205_v1, %s914_s23 }
 0x20e   :  { %613 = vrot.lane.b32.xlu0 %v669_v7, %s920_s7 }
 0x20f   :  { %296 = vrot.lane.b32.xlu1 %v204_v2, %s914_s23 }
 0x212   :  { %601 = vrot.lane.b32.xlu0 %v669_v7, %s921_s9 }
 0x213   :  { %687 = vrot.lane.b32.xlu1 %v670_v5, %s914_s23 }
 0x216   :  { %685 = vrot.lane.b32.xlu0 %v669_v7, %s914_s23  ;;  %v304_v7 = vld [vmem:[%s1177_s3] sm:$0xff] }
 0x217   :  { %330 = vperm.xlu1 %913, %v326_v10  }
 0x21a   :  { %335 = vperm.xlu0 %912, %v327_v11  }
 0x21b   :  { %719 = vperm.xlu1 %913, %v326_v10  }
 0x21e   :  { %724 = vperm.xlu0 %912, %v327_v11   ;;  %v307_v11 = vld [vmem:[%s1177_s3 + $0x18] sm:$0xff] }
 0x249   :  { %v287_v12 = vpop.permute.xlu1 %286 }
 0x24a   :  { %291 = vst.msk [vmem:[#allocation3 + $0x78] sm:$0xff] %vm28_vm0, %v287_v12 }
 0x24b   :  { %v285_v13 = vpop.permute.xlu0 %284 }
 0x24c   :  { %290 = vst.msk [vmem:[#allocation3 + $0x70] sm:$0xff] %vm28_vm0, %v285_v13  ;;  %v306_v13 = vld [vmem:[%s1177_s3 + $0x10] sm:$0xff] }
 0x24d   :  { %v275_v14 = vpop.permute.xlu1 %274 }
 0x24e   :  { %279 = vst.msk [vmem:[#allocation3 + $0x68] sm:$0xff] %vm28_vm0, %v275_v14  ;;  %v698_v14 = vld [vmem:[#allocation3 + $0x8] sm:$0xff] }
 0x24f   :  { %v273_v15 = vpop.permute.xlu0 %272 }
 0x250   :  { %278 = vst.msk [vmem:[#allocation3 + $0x60] sm:$0xff] %vm28_vm0, %v273_v15  ;;  %v697_v15 = vld [vmem:[#allocation3] sm:$0xff] }
 0x251   :  { %v263_v16 = vpop.permute.xlu1 %262  ;;  %v323_v17 = vld [vmem:[#allocation3 + $0x78] sm:$0xff] }
 0x252   :  { %267 = vst.msk [vmem:[#allocation3 + $0x58] sm:$0xff] %vm28_vm0, %v263_v16  ;;  %346 = vmatpush1.msra.mxu1 %v323_v17 }
 0x253   :  { %347 = vmatprep.subr.mxu1 %v923_v41  ;;  %v322_v19 = vld [vmem:[#allocation3 + $0x70] sm:$0xff] }
 0x254   :  { %v676_v18 = vpop.permute.xlu0 %675  ;;  %348 = vmatpush1.msra.mxu1 %v322_v19 }
 0x255   :  { %680 = vst.msk [vmem:[#allocation3 + $0x78] sm:$0xff] %vm28_vm0, %v676_v18  ;;  %v251_v20 = vpop.permute.xlu1 %250  ;;  %349 = vmatprep.subr.mxu1 %v923_v41  ;;  %v321_v21 = vld [vmem:[#allocation3 + $0x68] sm:$0xff] }
 0x256   :  { %255 = vst.msk [vmem:[#allocation3 + $0x48] sm:$0xff] %vm28_vm0, %v251_v20  ;;  %350 = vmatpush1.msra.mxu1 %v321_v21 }
 0x257   :  { %351 = vmatprep.subr.mxu1 %v923_v41  ;;  %v320_v23 = vld [vmem:[#allocation3 + $0x60] sm:$0xff] }
 0x258   :  { %v664_v22 = vpop.permute.xlu0 %663  ;;  %352 = vmatpush1.msra.mxu1 %v320_v23 }
 0x259   :  { %668 = vst.msk [vmem:[#allocation3 + $0x68] sm:$0xff] %vm28_vm0, %v664_v22  ;;  %v239_v24 = vpop.permute.xlu1 %238  ;;  %353 = vmatprep.subr.mxu1 %v923_v41  ;;  %v319_v25 = vld [vmem:[#allocation3 + $0x58] sm:$0xff] }
 0x25a   :  { %243 = vst.msk [vmem:[#allocation3 + $0x38] sm:$0xff] %vm28_vm0, %v239_v24  ;;  %354 = vmatpush1.msra.mxu1 %v319_v25 }
 0x25b   :  { %355 = vmatprep.subr.mxu1 %v923_v41 }
 0x25c   :  { %v652_v26 = vpop.permute.xlu0 %651  ;;  %v712_v27 = vld [vmem:[#allocation3 + $0x78] sm:$0xff] }
 0x25d   :  { %656 = vst.msk [vmem:[#allocation3 + $0x58] sm:$0xff] %vm28_vm0, %v652_v26  ;;  %734 = vmatpush1.msra.mxu0 %v712_v27  ;;  %v227_v28 = vpop.permute.xlu1 %226  ;;  %v317_v29 = vld [vmem:[#allocation3 + $0x48] sm:$0xff] }
 0x25e   :  { %735 = vmatprep.subr.mxu0 %v923_v41  ;;  %231 = vst.msk [vmem:[#allocation3 + $0x28] sm:$0xff] %vm28_vm0, %v227_v28 }
 0x260   :  { %v640_v30 = vpop.permute.xlu0 %639  ;;  %v710_v49 = vld [vmem:[#allocation3 + $0x68] sm:$0xff] }
 0x261   :  { %644 = vst.msk [vmem:[#allocation3 + $0x48] sm:$0xff] %vm28_vm0, %v640_v30  ;;  %v215_v31 = vpop.permute.xlu1 %214  ;;  %v315_v32 = vld [vmem:[#allocation3 + $0x38] sm:$0xff] }
 0x262   :  { %219 = vst.msk [vmem:[#allocation3 + $0x18] sm:$0xff] %vm28_vm0, %v215_v31 }
 0x264   :  { %v628_v33 = vpop.permute.xlu0 %627  ;;  %v708_v55 = vld [vmem:[#allocation3 + $0x58] sm:$0xff] }
 0x265   :  { %632 = vst.msk [vmem:[#allocation3 + $0x38] sm:$0xff] %vm28_vm0, %v628_v33  ;;  %v261_v34 = vpop.permute.xlu1 %260  ;;  %v313_v51 = vld [vmem:[#allocation3 + $0x28] sm:$0xff] }
 0x266   :  { %266 = vst.msk [vmem:[#allocation3 + $0x50] sm:$0xff] %vm28_vm0, %v261_v34 }
 0x268   :  { %v604_v35 = vpop.permute.xlu0 %603  ;;  %v706_v60 = vld [vmem:[#allocation3 + $0x48] sm:$0xff] }
 0x269   :  { %v311_v36 = vld [vmem:[#allocation3 + $0x18] sm:$0xff]  ;;  %v249_v37 = vpop.permute.xlu1 %248 }
 0x26a   :  { %608 = vst.msk [vmem:[#allocation3 + $0x18] sm:$0xff] %vm28_vm0, %v604_v35  ;;  %254 = vst.msk [vmem:[#allocation3 + $0x40] sm:$0xff] %vm28_vm0, %v249_v37 }
 0x26c   :  { %v674_v38 = vpop.permute.xlu0 %673  ;;  %v704_v0 = vld [vmem:[#allocation3 + $0x38] sm:$0xff] }
 0x26d   :  { %679 = vst.msk [vmem:[#allocation3 + $0x70] sm:$0xff] %vm28_vm0, %v674_v38  ;;  %v237_v39 = vpop.permute.xlu1 %236  ;;  %v318_v40 = vld [vmem:[#allocation3 + $0x50] sm:$0xff] }
 0x26e   :  { %242 = vst.msk [vmem:[#allocation3 + $0x30] sm:$0xff] %vm28_vm0, %v237_v39  ;;  %356 = vmatpush1.msra.mxu1 %v318_v40 }
 0x26f   :  { %357 = vmatprep.subr.mxu1 %v923_v41 }
 0x270   :  { %v662_v42 = vpop.permute.xlu0 %661  ;;  %358 = vmatpush1.msra.mxu1 %v317_v29 }
 0x271   :  { %667 = vst.msk [vmem:[#allocation3 + $0x60] sm:$0xff] %vm28_vm0, %v662_v42  ;;  %v225_v43 = vpop.permute.xlu1 %224  ;;  %359 = vmatprep.subr.mxu1 %v923_v41  ;;  %v316_v44 = vld [vmem:[#allocation3 + $0x40] sm:$0xff]  ;;  %v700_v10 = vld [vmem:[#allocation3 + $0x18] sm:$0xff] }
 0x272   :  { %230 = vst.msk [vmem:[#allocation3 + $0x20] sm:$0xff] %vm28_vm0, %v225_v43  ;;  %360 = vmatpush1.msra.mxu1 %v316_v44 }
 0x273   :  { %361 = vmatprep.subr.mxu1 %v923_v41 }
 0x274   :  { %v650_v45 = vpop.permute.xlu0 %649  ;;  %v711_v46 = vld [vmem:[#allocation3 + $0x70] sm:$0xff]  ;;  %362 = vmatpush1.msra.mxu1 %v315_v32 }
 0x275   :  { %655 = vst.msk [vmem:[#allocation3 + $0x50] sm:$0xff] %vm28_vm0, %v650_v45  ;;  %736 = vmatpush1.msra.mxu0 %v711_v46  ;;  %v213_v47 = vpop.permute.xlu1 %212  ;;  %363 = vmatprep.subr.mxu1 %v923_v41  ;;  %v314_v48 = vld [vmem:[#allocation3 + $0x30] sm:$0xff] }
 0x276   :  { %737 = vmatprep.subr.mxu0 %v923_v41  ;;  %218 = vst.msk [vmem:[#allocation3 + $0x10] sm:$0xff] %vm28_vm0, %v213_v47  ;;  %364 = vmatpush1.msra.mxu1 %v314_v48 }
 0x277   :  { %738 = vmatpush1.msra.mxu0 %v710_v49  ;;  %365 = vmatprep.subr.mxu1 %v923_v41 }
 0x278   :  { %739 = vmatprep.subr.mxu0 %v923_v41  ;;  %v638_v50 = vpop.permute.xlu0 %637  ;;  %v709_v52 = vld [vmem:[#allocation3 + $0x60] sm:$0xff]  ;;  %366 = vmatpush1.msra.mxu1 %v313_v51 }
 0x279   :  { %643 = vst.msk [vmem:[#allocation3 + $0x40] sm:$0xff] %vm28_vm0, %v638_v50  ;;  %740 = vmatpush1.msra.mxu0 %v709_v52  ;;  %v616_v53 = vpop.permute.xlu1 %615  ;;  %367 = vmatprep.subr.mxu1 %v923_v41  ;;  %v312_v54 = vld [vmem:[#allocation3 + $0x20] sm:$0xff] }
 0x27a   :  { %741 = vmatprep.subr.mxu0 %v923_v41  ;;  %620 = vst.msk [vmem:[#allocation3 + $0x28] sm:$0xff] %vm28_vm0, %v616_v53  ;;  %368 = vmatpush1.msra.mxu1 %v312_v54 }
 0x27b   :  { %742 = vmatpush1.msra.mxu0 %v708_v55  ;;  %369 = vmatprep.subr.mxu1 %v923_v41 }
 0x27c   :  { %743 = vmatprep.subr.mxu0 %v923_v41  ;;  %v626_v56 = vpop.permute.xlu0 %625  ;;  %v707_v57 = vld [vmem:[#allocation3 + $0x50] sm:$0xff]  ;;  %370 = vmatpush1.msra.mxu1 %v311_v36 }
 0x27d   :  { %631 = vst.msk [vmem:[#allocation3 + $0x30] sm:$0xff] %vm28_vm0, %v626_v56  ;;  %744 = vmatpush1.msra.mxu0 %v707_v57  ;;  %v299_v58 = vpop.permute.xlu1 %298  ;;  %371 = vmatprep.subr.mxu1 %v923_v41  ;;  %v310_v59 = vld [vmem:[#allocation3 + $0x10] sm:$0xff] }
 0x27e   :  { %745 = vmatprep.subr.mxu0 %v923_v41  ;;  %303 = vst.msk [vmem:[#allocation3 + $0x88] sm:$0xff] %vm28_vm0, %v299_v58  ;;  %372 = vmatpush1.msra.mxu1 %v310_v59 }
 0x27f   :  { %746 = vmatpush1.msra.mxu0 %v706_v60  ;;  %373 = vmatprep.subr.mxu1 %v923_v41 }
 0x280   :  { %747 = vmatprep.subr.mxu0 %v923_v41  ;;  %v614_v61 = vpop.permute.xlu0 %613  ;;  %v705_v62 = vld [vmem:[#allocation3 + $0x40] sm:$0xff]  ;;  %374 = vmatpush1.msra.mxu1 %v1034_v6 }
 0x281   :  { %619 = vst.msk [vmem:[#allocation3 + $0x20] sm:$0xff] %vm28_vm0, %v614_v61  ;;  %748 = vmatpush1.msra.mxu0 %v705_v62  ;;  %v297_v63 = vpop.permute.xlu1 %296  ;;  %375 = vmatprep.subr.mxu1 %v923_v41  ;;  %v702_v5 = vld [vmem:[#allocation3 + $0x28] sm:$0xff] }
 0x282   :  { %749 = vmatprep.subr.mxu0 %v923_v41  ;;  %302 = vst.msk [vmem:[#allocation3 + $0x80] sm:$0xff] %vm28_vm0, %v297_v63  ;;  %376 = vmatpush1.msra.mxu1 %v1038_v8 }
 0x283   :  { %750 = vmatpush1.msra.mxu0 %v704_v0  ;;  %405 = vmatprep.subr.mxu1 %v923_v41 }
 0x284   :  { %751 = vmatprep.subr.mxu0 %v923_v41  ;;  %v602_v1 = vpop.permute.xlu0 %601  ;;  %v703_v2 = vld [vmem:[#allocation3 + $0x30] sm:$0xff] }
 0x285   :  { %607 = vst.msk [vmem:[#allocation3 + $0x10] sm:$0xff] %vm28_vm0, %v602_v1  ;;  %752 = vmatpush1.msra.mxu0 %v703_v2  ;;  %v325_v3 = vld [vmem:[#allocation3 + $0x88] sm:$0xff]  ;;  %v688_v4 = vpop.permute.xlu1 %687 }
 0x286   :  { %753 = vmatprep.subr.mxu0 %v923_v41  ;;  %692 = vst.msk [vmem:[#allocation3 + $0x88] sm:$0xff] %vm28_vm0, %v688_v4  ;;  %406 = vmatpush2.msra.mxu1 %v325_v3 }
 0x287   :  { %754 = vmatpush1.msra.mxu0 %v702_v5  ;;  %407 = vmatprep.subr.mxu1 %v923_v41 }
 0x288   :  { %755 = vmatprep.subr.mxu0 %v923_v41  ;;  %v701_v6 = vld [vmem:[#allocation3 + $0x20] sm:$0xff]  ;;  %v686_v9 = vpop.permute.xlu0 %685 }
 0x289   :  { %756 = vmatpush1.msra.mxu0 %v701_v6  ;;  %v324_v8 = vld [vmem:[#allocation3 + $0x80] sm:$0xff] }
 0x28a   :  { %757 = vmatprep.subr.mxu0 %v923_v41  ;;  %691 = vst.msk [vmem:[#allocation3 + $0x80] sm:$0xff] %vm28_vm0, %v686_v9  ;;  %408 = vmatpush2.msra.mxu1 %v324_v8 }
 0x28b   :  { %758 = vmatpush1.msra.mxu0 %v700_v10  ;;  %410 = vmatmul.mubr.f32.vlgmr.msra.gmra.mxu1 %v304_v7 }
 0x28c   :  { %759 = vmatprep.subr.mxu0 %v923_v41  ;;  %v699_v12 = vld [vmem:[#allocation3 + $0x10] sm:$0xff]  ;;  %821 = vmatprep.mubr.msk.f32.mxu1 %vm338_vm4, %v307_v11 }
 0x28d   :  { %760 = vmatpush1.msra.mxu0 %v699_v12  ;;  %v714_v16 = vld [vmem:[#allocation3 + $0x88] sm:$0xff] }
 0x28e   :  { %761 = vmatprep.subr.mxu0 %v923_v41 }
 0x28f   :  { %762 = vmatpush1.msra.mxu0 %v698_v14  ;;  %415 = vmatmul.mubr.f32.gmra.mxu1 %v306_v13 }
 0x290   :  { %763 = vmatprep.subr.mxu0 %v923_v41 }
 0x291   :  { %764 = vmatpush1.msra.mxu0 %v697_v15  ;;  %v713_v17 = vld [vmem:[#allocation3 + $0x80] sm:$0xff] }
 0x292   :  { %793 = vmatprep.subr.mxu0 %v923_v41  ;;  %v331_v18 = vpop.permute.xlu1 %330 }
 0x293   :  { %794 = vmatpush2.msra.mxu0 %v714_v16 }
 0x294   :  { %795 = vmatprep.subr.mxu0 %v923_v41 }
 0x295   :  { %796 = vmatpush2.msra.mxu0 %v713_v17  ;;  %v336_v23 = vpop.permute.xlu0 %335 }
 0x296   :  { %798 = vmatmul.mubr.f32.vlgmr.msra.gmra.mxu0 %v304_v7  ;;  %v720_v27 = vpop.permute.xlu1 %719 }
 0x297   :  { %834 = vmatprep.mubr.msk.f32.mxu0 %vm338_vm4, %v307_v11 }
 0x299   :  { %v725_v32 = vpop.permute.xlu0 %724 }
 0x29a   :  { %803 = vmatmul.mubr.f32.gmra.mxu0 %v306_v13 }
 0x34b   :  { %v411_v19 = vpop.f32.mrf.mxu1 }
 0x34c   :  { %v412_v20 = vadd.f32 %v411_v19, %v331_v18 }
 0x34d   :  { %v413_v21 = vpop.f32.mrf.mxu1 }
 0x34e   :  { %v420_v22 = vmax.f32 %v412_v20, 0.0 }
 0x34f   :  { %v416_v24 = vpop.f32.mrf.mxu1 }
 0x350   :  { %422 = vst.msk [vmem:[%s1179_s6] sm:$0xff] %vm28_vm0, %v420_v22  ;;  %v417_v25 = vadd.f32 %v416_v24, %v336_v23 }
 0x351   :  { %v418_v41 = vpop.f32.mrf.mxu1 }
 0x352   :  { %v421_v26 = vmax.f32 %v417_v25, 0.0 }
 0x354   :  { %423 = vst.msk [vmem:[%s1179_s6 + $0x8] sm:$0xff] %vm28_vm0, %v421_v26 }
 0x356   :  { %v799_v28 = vpop.f32.mrf.mxu0 }
 0x357   :  { %v800_v29 = vadd.f32 %v799_v28, %v720_v27 }
 0x358   :  { %v801_v30 = vpop.f32.mrf.mxu0 }
 0x359   :  { %v808_v31 = vmax.f32 %v800_v29, 0.0 }
 0x35a   :  { %v804_v33 = vpop.f32.mrf.mxu0 }
 0x35b   :  { %835 = vst.msk [vmem:[%s1179_s6 + $0x10] sm:$0xff] %vm28_vm0, %v808_v31  ;;  %v805_v34 = vadd.f32 %v804_v33, %v725_v32 }
 0x35c   :  { %v806_v35 = vpop.f32.mrf.mxu0 }
 0x35d   :  { %v809_v36 = vmax.f32 %v805_v34, 0.0 }
 0x35f   :  { %836 = vst.msk [vmem:[%s1179_s6 + $0x18] sm:$0xff] %vm28_vm0, %v809_v36 }

// kernel: encoder_forward.2
= control target key start
LH: loop header
LB: loop body
LE: loop exit
PB: predicated region body
PF: predicated region fallthrough
CT: control target
= control target key end

     0   :  { %v1652_v2 = vmov 0.0   ;;  %s1653_s25 = smov 90   ;;  %s1654_s26 = smov 92   ;;  %vm35_vm0 = vcmask 240640   ;;  %vm1661_vm1 = vmmov 0   ;;  %v1662_v13 = vmov 0   ;;  %s2172_s0 = inlined_call_operand.vmem [shape: f32[2,4,324], index: 0, kind: input, shape index: {}]   ;;  %s2173_s2 = inlined_call_operand.vmem [shape: f32[8,1], index: 2, kind: input, shape index: {}]   ;;  %s2174_s1 = inlined_call_operand.vmem [shape: f32[8,36], index: 1, kind: input, shape index: {}]   ;;  %s2175_s5 = inlined_call_operand.vmem [shape: f32[1,286], index: 5, kind: input, shape index: {}]   ;;  %s2176_s3 = inlined_call_operand.vmem [shape: f32[8,72], index: 3, kind: input, shape index: {}]   ;;  %s2177_s4 = inlined_call_operand.vmem [shape: f32[8,1], index: 4, kind: input, shape index: {}]   ;;  %s2178_s6 = inlined_call_operand.vmem [shape: f32[2,8,286], index: 6, kind: output, shape index: {}]  }
   0x1   :  { %v183_v0 = vld [vmem:[%s2172_s0 + $0x8] sm:$0xf]  ;;  %v182_v1 = vld [vmem:[%s2172_s0] sm:$0xff]  ;;  %1558 = vmatprep.subr.mxu1 %v1652_v2  ;;  %24 = vst [vmem:[#allocation4] sm:$0xff] %v1652_v2  ;;  %302 = vmatprep.mubr.f32.mxu0 %v1652_v2  ;;  %s1655_s29 = smov 91   ;;  %s1656_s8 = smov 109  }
   0x2   :  { %191 = vrot.lane.b32.xlu0 %v183_v0, %s1653_s25  ;;  %187 = vrot.lane.b32.xlu1 %v182_v1, %s1653_s25  ;;  %v186_v3 = vcombine.high %v182_v1, %v182_v1  ;;  %33 = vst [vmem:[#allocation2] sm:$0xf] %v182_v1  ;;  %v142_v4 = vld [vmem:[%s2172_s0 + $0x8] sm:$0xf]  ;;  %v165_v6 = vcombine.low %v182_v1, %v182_v1  ;;  %s1657_s11 = smov 108   ;;  %s1658_s14 = smov 126  }
   0x3   :  { %v1642_v5 = vld [vmem:[%s2172_s0 + $0x8] ss:$0 sps:$4 sm:$0xff]   ;;  %s1659_s19 = smov 110   ;;  %s1660_s22 = smov 127   ;;  %1568 = vmatprep.mubr.msk.f32.mxu1 %vm1661_vm1, %v1652_v2  ;;  %1638 = vset.pattern.permute.xlu0 %v1662_v13  ;;  %v1762_v14 = vld [vmem:[%s2173_s2] sm:$0xff]  ;;  %vm193_vm2 = vcmask 736256  }
   0x4   :  { %34 = vst [vmem:[#allocation2 + $0x8] sm:$0xf] %v186_v3  ;;  %v101_v7 = vld [vmem:[%s2172_s0 + $0x8] sm:$0xf]  ;;  %1639 = vset.pattern.permute.xlu1 %v1662_v13  ;;  %vm152_vm3 = vcmask 752640   ;;  %vm228_vm4 = vcmask 1043456  }
   0x5   :  { %v1643_v8 = vld [vmem:[%s2172_s0 + $0x8] ss:$0 sps:$4 sm:$0xff]   ;;  %vm57_vm5 = vcmask 244740   ;;  %vm173_vm6 = vcmask 744448   ;;  %vm111_vm7 = vcmask 891904   ;;  %vm132_vm8 = vcmask 883712  }
   0x6   :  { %189 = vrot.lane.b32.xlu0 %v186_v3, %s1653_s25  ;;  %148 = vrot.lane.b32.xlu1 %v186_v3, %s1654_s26  ;;  %v60_v9 = vld [vmem:[%s2172_s0 + $0x8] sm:$0xf]  ;;  %vm70_vm9 = vcmask 1031168   ;;  %vm91_vm10 = vcmask 900096   ;;  %vm49_vm11 = vcmask 1039360   ;;  %vm224_vm12 = vcmask 293888  }
   0x7   :  { %v29_v10 = vld [vmem:[%s2172_s0 + $0x8] sm:$0xf]  ;;  %vm26_vm13 = vcmask 556032   ;;  %vm2179_vm14 = vcmask 1047704   ;;  %vm410_vm15 = vcmask 154624  }
   0x8   :  { %36 = vst.msk [vmem:[#allocation2 + $0x10] sm:$0xf] %vm35_vm0, %v29_v10  ;;  %v1644_v11 = vld [vmem:[%s2172_s0 + $0x8] ss:$0 sps:$4 sm:$0xff]  }
   0x9   :  { %v1645_v12 = vld [vmem:[%s2172_s0 + $0x8] ss:$0 sps:$4 sm:$0xff]   ;;  %27 = vst.msk [vmem:[#allocation4 + $0x10] sm:$0xff] %vm26_vm13, %v1652_v2  ;;  %vm419_vm13 = vcmask 400384  }
   0xa   :  { %150 = vrot.lane.b32.xlu0 %v142_v4, %s1654_s26  ;;  %169 = vrot.lane.b32.xlu1 %v182_v1, %s1655_s29  ;;  %v1799_v4 = vld [vmem:[%s2172_s0 + $0xc] sm:$0xff] }
   0xe   :  { %171 = vrot.lane.b32.xlu0 %v1642_v5, %s1655_s29  ;;  %146 = vrot.lane.b32.xlu1 %v182_v1, %s1654_s26  ;;  %v1499_v5 = vld [vmem:[%s2172_s0 + $0x14] sm:$0xf] }
  0x12   :  { %167 = vrot.lane.b32.xlu0 %v165_v6, %s1655_s29  ;;  %107 = vrot.lane.b32.xlu1 %v186_v3, %s1656_s8 }
  0x16   :  { %109 = vrot.lane.b32.xlu0 %v101_v7, %s1656_s8  ;;  %128 = vrot.lane.b32.xlu1 %v182_v1, %s1657_s11 }
  0x1a   :  { %130 = vrot.lane.b32.xlu0 %v1643_v8, %s1657_s11  ;;  %105 = vrot.lane.b32.xlu1 %v182_v1, %s1656_s8  ;;  %v777_v8 = vcombine.high %v1799_v4, %v1799_v4 }
  0x1e   :  { %126 = vrot.lane.b32.xlu0 %v165_v6, %s1657_s11  ;;  %66 = vrot.lane.b32.xlu1 %v186_v3, %s1658_s14 }
  0x22   :  { %68 = vrot.lane.b32.xlu0 %v60_v9, %s1658_s14  ;;  %87 = vrot.lane.b32.xlu1 %v182_v1, %s1659_s19 }
  0x26   :  { %89 = vrot.lane.b32.xlu0 %v1644_v11, %s1659_s19  ;;  %64 = vrot.lane.b32.xlu1 %v182_v1, %s1658_s14  ;;  %v383_v11 = vlaneseq }
  0x2a   :  { %85 = vrot.lane.b32.xlu0 %v165_v6, %s1659_s19  ;;  %45 = vrot.lane.b32.xlu1 %v182_v1, %s1660_s22 }
  0x2e   :  { %47 = vrot.lane.b32.xlu0 %v1645_v12, %s1660_s22  ;;  %43 = vrot.lane.b32.xlu1 %v165_v6, %s1660_s22  ;;  %v1807_v6 = vld [vmem:[%s2174_s1] sm:$0xff]  ;;  %v384_v12 = vshrl.u32 %v383_v11, 7 }
  0x30   :  { %v393_v13 = vsub.s32 2, %v384_v12 }
  0x32   :  { %221 = vperm.xlu0 %1638, %v1762_v14  }
  0x74   :  { %v192_v15 = vpop.permute.xlu0 %191  ;;  %v188_v16 = vpop.permute.xlu1 %187 }
  0x75   :  { %201 = vst.msk [vmem:[#allocation2 + $0x70] sm:$0xf] %vm35_vm0, %v192_v15 }
  0x78   :  { %v190_v17 = vpop.permute.xlu0 %189  ;;  %v149_v18 = vpop.permute.xlu1 %148 }
  0x79   :  { %v194_v19 = vsel %vm193_vm2, %v188_v16, %v190_v17  ;;  %v195_v20 = vsel %vm193_vm2, %v190_v17, %v192_v15  ;;  %v23_v16 = vld [vmem:[%s2175_s5] sm:$0x7]  ;;  %v385_v17 = vsub.s32 0, %v384_v12  ;;  %s1663_s5 = smov 19  }
  0x7a   :  { %199 = vst [vmem:[#allocation2 + $0x60] sm:$0xf] %v194_v19  ;;  %200 = vst [vmem:[#allocation2 + $0x68] sm:$0xf] %v195_v20  ;;  %v1825_v20 = vrot.slane %v23_v16, %v393_v13 }
  0x7c   :  { %v151_v21 = vpop.permute.xlu0 %150  ;;  %v170_v22 = vpop.permute.xlu1 %169  ;;  %v217_v23 = vld [vmem:[#allocation2 + $0x70] sm:$0xf] }
  0x7d   :  { %v154_v24 = vsel %vm152_vm3, %v149_v18, %v151_v21  ;;  %160 = vst.msk [vmem:[#allocation2 + $0x58] sm:$0xf] %vm35_vm0, %v151_v21  ;;  %1559 = vmatpush3.msk.msra.mxu1 %vm228_vm4, %v217_v23 }
  0x7e   :  { %159 = vst [vmem:[#allocation2 + $0x50] sm:$0xf] %v154_v24  ;;  %1560 = vmatprep.subr.mxu1 %v1652_v2  ;;  %v1827_v24 = vrot.slane %v23_v16, %v385_v17  ;;  %v1650_v17 = vld [vmem:[%s2172_s0 + $0x14] ss:$0 sps:$4 sm:$0xff]  }
  0x80   :  { %v172_v25 = vpop.permute.xlu0 %171  ;;  %v147_v26 = vpop.permute.xlu1 %146 }
  0x81   :  { %v175_v27 = vsel %vm173_vm6, %v170_v22, %v172_v25  ;;  %181 = vst.msk [vmem:[#allocation2 + $0x58] sm:$0xf0] %vm57_vm5, %v172_v25  ;;  %v153_v28 = vsel %vm152_vm3, %v147_v26, %v149_v18  ;;  %v216_v29 = vld [vmem:[#allocation2 + $0x68] sm:$0xf]  ;;  %v215_v30 = vld [vmem:[#allocation2 + $0x60] sm:$0xf] }
  0x82   :  { %180 = vst [vmem:[#allocation2 + $0x50] sm:$0xf0] %v175_v27  ;;  %158 = vst [vmem:[#allocation2 + $0x48] sm:$0xf] %v153_v28  ;;  %1491 = vmatprep.subr.msk.mxu0 %vm228_vm4, %v216_v29  ;;  %v389_v26 = vsub.s32 1, %v384_v12 }
  0x83   :  { %1492 = vmatpush1.msk.msra.mxu0 %vm228_vm4, %v215_v30 }
  0x84   :  { %v168_v31 = vpop.permute.xlu0 %167  ;;  %v108_v32 = vpop.permute.xlu1 %107 }
  0x85   :  { %v174_v33 = vsel %vm173_vm6, %v168_v31, %v170_v22 }
  0x86   :  { %179 = vst [vmem:[#allocation2 + $0x48] sm:$0xf0] %v174_v33  ;;  %v1831_v33 = vrot.slane %v23_v16, %v389_v26 }
  0x88   :  { %v110_v34 = vpop.permute.xlu0 %109  ;;  %v129_v35 = vpop.permute.xlu1 %128  ;;  %v214_v36 = vld [vmem:[#allocation2 + $0x58] sm:$0xff] }
  0x89   :  { %v113_v37 = vsel %vm111_vm7, %v108_v32, %v110_v34  ;;  %119 = vst.msk [vmem:[#allocation2 + $0x40] sm:$0xf] %vm35_vm0, %v110_v34  ;;  %1561 = vmatpush3.msra.mxu1 %v214_v36  ;;  %v213_v38 = vld [vmem:[#allocation2 + $0x50] sm:$0xff] }
  0x8a   :  { %118 = vst [vmem:[#allocation2 + $0x38] sm:$0xf] %v113_v37  ;;  %262 = vmatprep.subr.mxu0 %v213_v38  ;;  %1562 = vmatprep.subr.mxu1 %v1652_v2  ;;  %v1515_v34 = vld [vmem:[%s2172_s0 + $0x14] sm:$0xf]  ;;  %v1859_v38 = vcombine.low %v1799_v4, %v1799_v4 }
  0x8b   :  { %v1511_v36 = vld [vmem:[%s2172_s0 + $0x14] sm:$0xf] }
  0x8c   :  { %v131_v39 = vpop.permute.xlu0 %130  ;;  %v106_v40 = vpop.permute.xlu1 %105  ;;  %v1648_v37 = vld [vmem:[%s2172_s0 + $0x14] ss:$0 sps:$4 sm:$0xff]  }
  0x8d   :  { %v134_v41 = vsel %vm132_vm8, %v129_v35, %v131_v39  ;;  %140 = vst.msk [vmem:[#allocation2 + $0x40] sm:$0xf0] %vm57_vm5, %v131_v39  ;;  %v112_v42 = vsel %vm111_vm7, %v106_v40, %v108_v32  ;;  %v212_v43 = vld [vmem:[#allocation2 + $0x48] sm:$0xff]  ;;  %v1507_v39 = vld [vmem:[%s2172_s0 + $0x14] sm:$0xf] }
  0x8e   :  { %139 = vst [vmem:[#allocation2 + $0x38] sm:$0xf0] %v134_v41  ;;  %117 = vst [vmem:[#allocation2 + $0x30] sm:$0xf] %v112_v42  ;;  %263 = vmatpush1.msra.mxu0 %v212_v43  ;;  %v1649_v40 = vld [vmem:[%s2172_s0 + $0x14] ss:$0 sps:$4 sm:$0xff]  }
  0x8f   :  { %v1503_v41 = vld [vmem:[%s2172_s0 + $0x14] sm:$0xf] }
  0x90   :  { %v127_v44 = vpop.permute.xlu0 %126  ;;  %v67_v45 = vpop.permute.xlu1 %66 }
  0x91   :  { %v133_v46 = vsel %vm132_vm8, %v127_v44, %v129_v35 }
  0x92   :  { %138 = vst [vmem:[#allocation2 + $0x30] sm:$0xf0] %v133_v46 }
  0x94   :  { %v69_v47 = vpop.permute.xlu0 %68  ;;  %v88_v48 = vpop.permute.xlu1 %87  ;;  %v211_v49 = vld [vmem:[#allocation2 + $0x40] sm:$0xff] }
  0x95   :  { %v72_v50 = vsel %vm70_vm9, %v67_v45, %v69_v47  ;;  %78 = vst.msk [vmem:[#allocation2 + $0x28] sm:$0xf] %vm35_vm0, %v69_v47  ;;  %1563 = vmatpush3.msra.mxu1 %v211_v49  ;;  %v210_v51 = vld [vmem:[#allocation2 + $0x38] sm:$0xff] }
  0x96   :  { %77 = vst [vmem:[#allocation2 + $0x20] sm:$0xf] %v72_v50  ;;  %264 = vmatprep.subr.mxu0 %v210_v51  ;;  %1564 = vmatprep.subr.mxu1 %v1652_v2 }
  0x98   :  { %v90_v52 = vpop.permute.xlu0 %89  ;;  %v65_v53 = vpop.permute.xlu1 %64 }
  0x99   :  { %v93_v54 = vsel %vm91_vm10, %v88_v48, %v90_v52  ;;  %99 = vst.msk [vmem:[#allocation2 + $0x28] sm:$0xf0] %vm57_vm5, %v90_v52  ;;  %v71_v55 = vsel %vm70_vm9, %v65_v53, %v67_v45  ;;  %v209_v56 = vld [vmem:[#allocation2 + $0x30] sm:$0xff] }
  0x9a   :  { %98 = vst [vmem:[#allocation2 + $0x20] sm:$0xf0] %v93_v54  ;;  %76 = vst [vmem:[#allocation2 + $0x18] sm:$0xf] %v71_v55  ;;  %265 = vmatpush1.msra.mxu0 %v209_v56 }
  0x9c   :  { %v86_v57 = vpop.permute.xlu0 %85  ;;  %v46_v58 = vpop.permute.xlu1 %45 }
  0x9d   :  { %v92_v59 = vsel %vm91_vm10, %v86_v57, %v88_v48 }
  0x9e   :  { %97 = vst [vmem:[#allocation2 + $0x18] sm:$0xf0] %v92_v59 }
  0xa0   :  { %v48_v60 = vpop.permute.xlu0 %47  ;;  %v44_v61 = vpop.permute.xlu1 %43  ;;  %v208_v62 = vld [vmem:[#allocation2 + $0x28] sm:$0xff] }
  0xa1   :  { %v51_v63 = vsel %vm49_vm11, %v46_v58, %v48_v60  ;;  %58 = vst.msk [vmem:[#allocation2 + $0x10] sm:$0xf0] %vm57_vm5, %v48_v60  ;;  %v50_v0 = vsel %vm49_vm11, %v44_v61, %v46_v58  ;;  %1565 = vmatpush3.msra.mxu1 %v208_v62  ;;  %v207_v1 = vld [vmem:[#allocation2 + $0x20] sm:$0xff] }
  0xa2   :  { %56 = vst [vmem:[#allocation2 + $0x8] sm:$0xf0] %v51_v63  ;;  %55 = vst [vmem:[#allocation2] sm:$0xf0] %v50_v0  ;;  %266 = vmatprep.subr.mxu0 %v207_v1  ;;  %1566 = vmatprep.subr.mxu1 %v1652_v2 }
  0xa5   :  { %v206_v3 = vld [vmem:[#allocation2 + $0x18] sm:$0xff] }
  0xa6   :  { %267 = vmatpush1.msra.mxu0 %v206_v3 }
  0xa8   :  { %v205_v7 = vld [vmem:[#allocation2 + $0x10] sm:$0xff] }
  0xa9   :  { %1567 = vmatpush3.msra.mxu1 %v205_v7  ;;  %781 = vst.msk [vmem:[#allocation2 + $0x10] sm:$0xf] %vm35_vm0, %v1499_v5  ;;  %v204_v9 = vld [vmem:[#allocation2 + $0x8] sm:$0xff]  ;;  %v203_v10 = vld [vmem:[#allocation2] sm:$0xff] }
  0xaa   :  { %268 = vmatprep.subr.mxu0 %v204_v9  ;;  %780 = vst [vmem:[#allocation2 + $0x8] sm:$0xf] %v777_v8  ;;  %779 = vst [vmem:[#allocation2] sm:$0xf] %v1799_v4  ;;  %1569 = vmatmul.mubr.msk.f32.vlgmr.msra.gmra.mxu1 %vm224_vm12, %v1807_v6 }
  0xab   :  { %269 = vmatpush1.msra.mxu0 %v203_v10  ;;  %1571 = vmatprep.subr.mxu1 %v1652_v2 }
  0xac   :  { %1493 = vmatmul.mubr.msk.f32.vlgmr.msra.gmra.mxu0 %vm224_vm12, %v1807_v6  ;;  %1589 = vmatprep.mubr.msk.f32.mxu1 %vm1661_vm1, %v1652_v2 }
  0xad   :  { %690 = vmatprep.mubr.f32.mxu0 %v1652_v2  ;;  %v222_v15 = vpop.permute.xlu0 %221 }
 0x16a   :  { %v375_v18 = vpop.f32.mrf.mxu1 }
 0x16b   :  { %v376_v19 = vadd.f32 %v375_v18, %v222_v15  ;;  %v1651_v18 = vld [vmem:[%s2172_s0 + $0x14] ss:$0 sps:$4 sm:$0xff]  }
 0x16c   :  { %v304_v21 = vpop.f32.mrf.mxu0  ;;  %v1570_v22 = vpop.f32.mrf.mxu1 }
 0x16d   :  { %v305_v23 = vadd.f32 %v304_v21, %v222_v15  ;;  %v381_v25 = vmax.f32 %v376_v19, 0.0 }
 0x16e   :  { %v306_v27 = vpop.f32.mrf.mxu0 }
 0x16f   :  { %v379_v28 = vmax.f32 %v305_v23, 0.0  ;;  %v400_v29 = vmul.f32 %v1825_v20, %v381_v25  ;;  %v307_v30 = vadd.f32 %v306_v27, %v222_v15 }
 0x171   :  { %v398_v31 = vmul.f32 %v1827_v24, %v379_v28  ;;  %v380_v32 = vmax.f32 %v307_v30, 0.0  ;;  %408 = vrot.lane.b32.xlu0 %v400_v29, %s1663_s5 }
 0x173   :  { %404 = vrot.lane.b32.xlu1 %v398_v31, %s1663_s5  ;;  %v399_v35 = vmul.f32 %v1831_v33, %v380_v32 }
 0x175   :  { %928 = vrot.lane.b32.xlu0 %v1515_v34, %s1653_s25 }
 0x177   :  { %406 = vrot.lane.b32.xlu1 %v399_v35, %s1663_s5 }
 0x179   :  { %887 = vrot.lane.b32.xlu0 %v777_v8, %s1654_s26 }
 0x17b   :  { %926 = vrot.lane.b32.xlu1 %v777_v8, %s1653_s25 }
 0x17d   :  { %907 = vrot.lane.b32.xlu0 %v1799_v4, %s1655_s29 }
 0x17f   :  { %924 = vrot.lane.b32.xlu1 %v1799_v4, %s1653_s25 }
 0x181   :  { %885 = vrot.lane.b32.xlu0 %v1799_v4, %s1654_s26 }
 0x183   :  { %889 = vrot.lane.b32.xlu1 %v1511_v36, %s1654_s26 }
 0x185   :  { %848 = vrot.lane.b32.xlu0 %v777_v8, %s1656_s8 }
 0x187   :  { %909 = vrot.lane.b32.xlu1 %v1648_v37, %s1655_s29 }
 0x189   :  { %868 = vrot.lane.b32.xlu0 %v1799_v4, %s1657_s11 }
 0x18b   :  { %905 = vrot.lane.b32.xlu1 %v1859_v38, %s1655_s29 }
 0x18d   :  { %846 = vrot.lane.b32.xlu0 %v1799_v4, %s1656_s8 }
 0x18f   :  { %850 = vrot.lane.b32.xlu1 %v1507_v39, %s1656_s8 }
 0x191   :  { %809 = vrot.lane.b32.xlu0 %v777_v8, %s1658_s14 }
 0x193   :  { %870 = vrot.lane.b32.xlu1 %v1649_v40, %s1657_s11 }
 0x197   :  { %866 = vrot.lane.b32.xlu1 %v1859_v38, %s1657_s11 }
 0x19b   :  { %811 = vrot.lane.b32.xlu1 %v1503_v41, %s1658_s14 }
 0x1e3   :  { %v409_v42 = vpop.permute.xlu0 %408 }
 0x1e5   :  { %v405_v43 = vpop.permute.xlu1 %404 }
 0x1e6   :  { %417 = vst.msk [vmem:[#allocation4] sm:$0xff] %vm2179_vm14, %v405_v43  ;;  %vm426_vm14 = vcmask 244736  }
 0x1e7   :  { %v929_v44 = vpop.permute.xlu0 %928 }
 0x1e8   :  { %937 = vst.msk [vmem:[#allocation2 + $0x70] sm:$0xf] %vm35_vm0, %v929_v44 }
 0x1e9   :  { %v407_v45 = vpop.permute.xlu1 %406 }
 0x1ea   :  { %v412_v46 = vsel %vm410_vm15, %v407_v45, %v409_v42  ;;  %v1914_v63 = vsel %vm410_vm15, %v405_v43, %v407_v45 }
 0x1eb   :  { %420 = vst.msk [vmem:[#allocation4 + $0x10] sm:$0xff] %vm419_vm13, %v412_v46  ;;  %v888_v47 = vpop.permute.xlu0 %887 }
 0x1ed   :  { %v1887_v48 = vld [vmem:[#allocation4] sm:$0xff]  ;;  %v927_v49 = vpop.permute.xlu1 %926 }
 0x1ee   :  { %574 = vrot.lane.b32.xlu1 %v1887_v48, %s1653_s25  ;;  %554 = vrot.lane.b32.xlu0 %v1887_v48, %s1655_s29  ;;  %v931_v50 = vsel %vm193_vm2, %v927_v49, %v929_v44 }
 0x1ef   :  { %936 = vst [vmem:[#allocation2 + $0x68] sm:$0xf] %v931_v50  ;;  %v908_v51 = vpop.permute.xlu0 %907 }
 0x1f1   :  { %v925_v52 = vpop.permute.xlu1 %924 }
 0x1f2   :  { %v423_v53 = vld [vmem:[#allocation4 + $0x10] sm:$0xff]  ;;  %534 = vrot.lane.b32.xlu1 %v1887_v48, %s1654_s26  ;;  %514 = vrot.lane.b32.xlu0 %v1887_v48, %s1657_s11  ;;  %v930_v54 = vsel %vm193_vm2, %v925_v52, %v927_v49 }
 0x1f3   :  { %935 = vst [vmem:[#allocation2 + $0x60] sm:$0xf] %v930_v54  ;;  %v886_v55 = vpop.permute.xlu0 %885  ;;  %427 = vst.msk [vmem:[#allocation3 + $0x10] sm:$0xff] %vm426_vm14, %v423_v53 }
 0x1f4   :  { %v891_v56 = vsel %vm152_vm3, %v886_v55, %v888_v47 }
 0x1f5   :  { %v890_v57 = vpop.permute.xlu1 %889  ;;  %896 = vst [vmem:[#allocation2 + $0x48] sm:$0xf] %v891_v56 }
 0x1f6   :  { %494 = vrot.lane.b32.xlu1 %v1887_v48, %s1656_s8  ;;  %474 = vrot.lane.b32.xlu0 %v1887_v48, %s1659_s19  ;;  %v892_v58 = vsel %vm152_vm3, %v888_v47, %v890_v57  ;;  %898 = vst.msk [vmem:[#allocation2 + $0x58] sm:$0xf] %vm35_vm0, %v890_v57 }
 0x1f7   :  { %897 = vst [vmem:[#allocation2 + $0x50] sm:$0xf] %v892_v58  ;;  %v849_v59 = vpop.permute.xlu0 %848 }
 0x1f9   :  { %v910_v60 = vpop.permute.xlu1 %909 }
 0x1fa   :  { %454 = vrot.lane.b32.xlu1 %v1887_v48, %s1658_s14  ;;  %434 = vrot.lane.b32.xlu0 %v1887_v48, %s1660_s22  ;;  %v912_v61 = vsel %vm173_vm6, %v908_v51, %v910_v60  ;;  %918 = vst.msk [vmem:[#allocation2 + $0x58] sm:$0xf0] %vm57_vm5, %v910_v60 }
 0x1fb   :  { %917 = vst [vmem:[#allocation2 + $0x50] sm:$0xf0] %v912_v61  ;;  %v869_v62 = vpop.permute.xlu0 %868 }
 0x1fd   :  { %v906_v0 = vpop.permute.xlu1 %905 }
 0x1fe   :  { %578 = vrot.lane.b32.xlu0 %v423_v53, %s1653_s25  ;;  %576 = vrot.lane.b32.xlu1 %v1914_v63, %s1653_s25  ;;  %v911_v1 = vsel %vm173_vm6, %v906_v0, %v908_v51 }
 0x1ff   :  { %916 = vst [vmem:[#allocation2 + $0x48] sm:$0xf0] %v911_v1  ;;  %v847_v3 = vpop.permute.xlu0 %846 }
 0x200   :  { %v852_v5 = vsel %vm111_vm7, %v847_v3, %v849_v59 }
 0x201   :  { %v851_v7 = vpop.permute.xlu1 %850  ;;  %857 = vst [vmem:[#allocation2 + $0x30] sm:$0xf] %v852_v5 }
 0x202   :  { %558 = vrot.lane.b32.xlu1 %v423_v53, %s1655_s29  ;;  %556 = vrot.lane.b32.xlu0 %v1914_v63, %s1655_s29  ;;  %v853_v8 = vsel %vm111_vm7, %v849_v59, %v851_v7  ;;  %859 = vst.msk [vmem:[#allocation2 + $0x40] sm:$0xf] %vm35_vm0, %v851_v7 }
 0x203   :  { %858 = vst [vmem:[#allocation2 + $0x38] sm:$0xf] %v853_v8  ;;  %v1935_v13 = vpop.permute.xlu0 %809 }
 0x205   :  { %v871_v9 = vpop.permute.xlu1 %870 }
 0x206   :  { %538 = vrot.lane.b32.xlu0 %v423_v53, %s1654_s26  ;;  %536 = vrot.lane.b32.xlu1 %v1914_v63, %s1654_s26  ;;  %v873_v10 = vsel %vm132_vm8, %v869_v62, %v871_v9  ;;  %879 = vst.msk [vmem:[#allocation2 + $0x40] sm:$0xf0] %vm57_vm5, %v871_v9 }
 0x207   :  { %878 = vst [vmem:[#allocation2 + $0x38] sm:$0xf0] %v873_v10  ;;  %v2008_v10 = vld [vmem:[%s2176_s3] sm:$0xff] }
 0x209   :  { %v867_v11 = vpop.permute.xlu1 %866 }
 0x20a   :  { %518 = vrot.lane.b32.xlu1 %v423_v53, %s1657_s11  ;;  %516 = vrot.lane.b32.xlu0 %v1914_v63, %s1657_s11  ;;  %v872_v12 = vsel %vm132_vm8, %v867_v11, %v869_v62 }
 0x20b   :  { %877 = vst [vmem:[#allocation2 + $0x30] sm:$0xf0] %v872_v12  ;;  %v952_v12 = vld [vmem:[#allocation2 + $0x68] sm:$0xf] }
 0x20d   :  { %v812_v15 = vpop.permute.xlu1 %811 }
 0x20e   :  { %498 = vrot.lane.b32.xlu0 %v423_v53, %s1656_s8  ;;  %496 = vrot.lane.b32.xlu1 %v1914_v63, %s1656_s8  ;;  %v814_v16 = vsel %vm70_vm9, %v1935_v13, %v812_v15  ;;  %820 = vst.msk [vmem:[#allocation2 + $0x28] sm:$0xf] %vm35_vm0, %v812_v15  ;;  %vm622_vm0 = vcmask 588800  }
 0x20f   :  { %819 = vst [vmem:[#allocation2 + $0x20] sm:$0xf] %v814_v16 }
 0x212   :  { %478 = vrot.lane.b32.xlu1 %v423_v53, %s1659_s19  ;;  %476 = vrot.lane.b32.xlu0 %v1914_v63, %s1659_s19 }
 0x216   :  { %458 = vrot.lane.b32.xlu0 %v423_v53, %s1658_s14  ;;  %456 = vrot.lane.b32.xlu1 %v1914_v63, %s1658_s14 }
 0x21a   :  { %438 = vrot.lane.b32.xlu1 %v423_v53, %s1660_s22  ;;  %436 = vrot.lane.b32.xlu0 %v1914_v63, %s1660_s22 }
 0x21e   :  { %831 = vrot.lane.b32.xlu1 %v1650_v17, %s1659_s19  ;;  %829 = vrot.lane.b32.xlu0 %v1799_v4, %s1659_s19 }
 0x222   :  { %827 = vrot.lane.b32.xlu1 %v1859_v38, %s1659_s19  ;;  %807 = vrot.lane.b32.xlu0 %v1799_v4, %s1658_s14 }
 0x226   :  { %792 = vrot.lane.b32.xlu1 %v1651_v18, %s1660_s22  ;;  %790 = vrot.lane.b32.xlu0 %v1799_v4, %s1660_s22  ;;  %v949_v18 = vld [vmem:[#allocation2 + $0x50] sm:$0xff] }
 0x22a   :  { %788 = vrot.lane.b32.xlu0 %v1859_v38, %s1660_s22  ;;  %957 = vperm.xlu1 %1639, %v1762_v14  }
 0x260   :  { %v555_v19 = vpop.permute.xlu0 %554  ;;  %v575_v21 = vpop.permute.xlu1 %574 }
 0x264   :  { %v515_v22 = vpop.permute.xlu0 %514  ;;  %v535_v23 = vpop.permute.xlu1 %534 }
 0x268   :  { %v475_v25 = vpop.permute.xlu0 %474  ;;  %v495_v26 = vpop.permute.xlu1 %494 }
 0x26c   :  { %v1971_v27 = vpop.permute.xlu0 %434  ;;  %v455_v28 = vpop.permute.xlu1 %454 }
 0x270   :  { %v579_v29 = vpop.permute.xlu0 %578  ;;  %v577_v30 = vpop.permute.xlu1 %576 }
 0x271   :  { %587 = vst.msk [vmem:[#allocation3 + $0xd0] sm:$0xff] %vm426_vm14, %v579_v29  ;;  %v580_v4 = vsel %vm193_vm2, %v575_v21, %v577_v30  ;;  %v581_v31 = vsel %vm193_vm2, %v577_v30, %v579_v29  ;;  %v948_v21 = vld [vmem:[#allocation2 + $0x48] sm:$0xff]  ;;  %v950_v30 = vld [vmem:[#allocation2 + $0x58] sm:$0xff] }
 0x272   :  { %640 = vmatprep.subr.mxu0 %v581_v31  ;;  %v947_v31 = vld [vmem:[#allocation2 + $0x40] sm:$0xff] }
 0x273   :  { %641 = vmatpush1.msra.mxu0 %v580_v4 }
 0x274   :  { %v557_v14 = vpop.permute.xlu0 %556  ;;  %v559_v32 = vpop.permute.xlu1 %558 }
 0x275   :  { %v560_v34 = vsel %vm173_vm6, %v555_v19, %v557_v14  ;;  %v561_v35 = vsel %vm173_vm6, %v557_v14, %v559_v32  ;;  %567 = vst.msk [vmem:[#allocation3 + $0xb8] sm:$0xff] %vm426_vm14, %v559_v32 }
 0x276   :  { %642 = vmatprep.subr.mxu0 %v561_v35 }
 0x277   :  { %643 = vmatpush1.msra.mxu0 %v560_v34 }
 0x278   :  { %v539_v36 = vpop.permute.xlu0 %538  ;;  %v537_v37 = vpop.permute.xlu1 %536  ;;  %v615_v38 = vld [vmem:[#allocation3 + $0xd0] sm:$0xff] }
 0x279   :  { %547 = vst.msk [vmem:[#allocation3 + $0xa0] sm:$0xff] %vm426_vm14, %v539_v36  ;;  %v540_v39 = vsel %vm152_vm3, %v535_v23, %v537_v37  ;;  %v541_v40 = vsel %vm152_vm3, %v537_v37, %v539_v36  ;;  %1572 = vmatpush3.msra.mxu1 %v615_v38  ;;  %v946_v23 = vld [vmem:[#allocation2 + $0x38] sm:$0xff] }
 0x27a   :  { %1573 = vmatprep.subr.mxu1 %v1652_v2  ;;  %644 = vmatprep.subr.mxu0 %v541_v40 }
 0x27b   :  { %645 = vmatpush1.msra.mxu0 %v540_v39 }
 0x27c   :  { %v517_v41 = vpop.permute.xlu0 %516  ;;  %v519_v42 = vpop.permute.xlu1 %518  ;;  %v612_v43 = vld [vmem:[#allocation3 + $0xb8] sm:$0xff] }
 0x27d   :  { %v520_v44 = vsel %vm132_vm8, %v515_v22, %v517_v41  ;;  %v521_v45 = vsel %vm132_vm8, %v517_v41, %v519_v42  ;;  %527 = vst.msk [vmem:[#allocation3 + $0x88] sm:$0xff] %vm426_vm14, %v519_v42  ;;  %1574 = vmatpush3.msra.mxu1 %v612_v43  ;;  %v591_v22 = vld [vmem:[#allocation3 + $0x10] sm:$0xff] }
 0x27e   :  { %1575 = vmatprep.subr.mxu1 %v1652_v2  ;;  %646 = vmatprep.subr.mxu0 %v521_v45 }
 0x27f   :  { %647 = vmatpush1.msra.mxu0 %v520_v44 }
 0x280   :  { %v499_v46 = vpop.permute.xlu0 %498  ;;  %v497_v47 = vpop.permute.xlu1 %496  ;;  %v609_v49 = vld [vmem:[#allocation3 + $0xa0] sm:$0xff] }
 0x281   :  { %507 = vst.msk [vmem:[#allocation3 + $0x70] sm:$0xff] %vm426_vm14, %v499_v46  ;;  %v500_v50 = vsel %vm111_vm7, %v495_v26, %v497_v47  ;;  %v501_v51 = vsel %vm111_vm7, %v497_v47, %v499_v46  ;;  %1576 = vmatpush3.msra.mxu1 %v609_v49 }
 0x282   :  { %1577 = vmatprep.subr.mxu1 %v1652_v2  ;;  %648 = vmatprep.subr.mxu0 %v501_v51 }
 0x283   :  { %649 = vmatpush1.msra.mxu0 %v500_v50 }
 0x284   :  { %v477_v52 = vpop.permute.xlu0 %476  ;;  %v479_v53 = vpop.permute.xlu1 %478  ;;  %v606_v54 = vld [vmem:[#allocation3 + $0x88] sm:$0xff] }
 0x285   :  { %v480_v55 = vsel %vm91_vm10, %v475_v25, %v477_v52  ;;  %v481_v56 = vsel %vm91_vm10, %v477_v52, %v479_v53  ;;  %487 = vst.msk [vmem:[#allocation3 + $0x58] sm:$0xff] %vm426_vm14, %v479_v53  ;;  %1578 = vmatpush3.msra.mxu1 %v606_v54 }
 0x286   :  { %1579 = vmatprep.subr.mxu1 %v1652_v2  ;;  %650 = vmatprep.subr.mxu0 %v481_v56 }
 0x287   :  { %651 = vmatpush1.msra.mxu0 %v480_v55 }
 0x288   :  { %v459_v57 = vpop.permute.xlu0 %458  ;;  %v457_v58 = vpop.permute.xlu1 %456  ;;  %v603_v59 = vld [vmem:[#allocation3 + $0x70] sm:$0xff] }
 0x289   :  { %467 = vst.msk [vmem:[#allocation3 + $0x40] sm:$0xff] %vm426_vm14, %v459_v57  ;;  %v460_v60 = vsel %vm70_vm9, %v455_v28, %v457_v58  ;;  %v461_v61 = vsel %vm70_vm9, %v457_v58, %v459_v57  ;;  %1580 = vmatpush3.msra.mxu1 %v603_v59 }
 0x28a   :  { %1581 = vmatprep.subr.mxu1 %v1652_v2  ;;  %652 = vmatprep.subr.mxu0 %v461_v61 }
 0x28b   :  { %653 = vmatpush1.msra.mxu0 %v460_v60  ;;  %v1330_v60 = vld [vmem:[%s2177_s4] sm:$0xff] }
 0x28c   :  { %v437_v62 = vpop.permute.xlu0 %436  ;;  %v439_v0 = vpop.permute.xlu1 %438  ;;  %v600_v1 = vld [vmem:[#allocation3 + $0x58] sm:$0xff] }
 0x28d   :  { %v440_v3 = vsel %vm49_vm11, %v1971_v27, %v437_v62  ;;  %v441_v5 = vsel %vm49_vm11, %v437_v62, %v439_v0  ;;  %447 = vst.msk [vmem:[#allocation3 + $0x28] sm:$0xff] %vm426_vm14, %v439_v0  ;;  %1582 = vmatpush3.msra.mxu1 %v600_v1  ;;  %v945_v27 = vld [vmem:[#allocation2 + $0x30] sm:$0xff] }
 0x28e   :  { %1583 = vmatprep.subr.mxu1 %v1652_v2  ;;  %654 = vmatprep.subr.mxu0 %v441_v5 }
 0x28f   :  { %655 = vmatpush1.msra.mxu0 %v440_v3 }
 0x290   :  { %v830_v7 = vpop.permute.xlu0 %829  ;;  %v832_v8 = vpop.permute.xlu1 %831  ;;  %v597_v9 = vld [vmem:[#allocation3 + $0x40] sm:$0xff]  ;;  %656 = vmatprep.subr.mxu0 %v1914_v63  ;;  %v951_v63 = vld [vmem:[#allocation2 + $0x60] sm:$0xf] }
 0x291   :  { %v834_v11 = vsel %vm91_vm10, %v830_v7, %v832_v8  ;;  %840 = vst.msk [vmem:[#allocation2 + $0x28] sm:$0xf0] %vm57_vm5, %v832_v8  ;;  %1584 = vmatpush3.msra.mxu1 %v597_v9  ;;  %657 = vmatpush1.msra.mxu0 %v1887_v48 }
 0x292   :  { %839 = vst [vmem:[#allocation2 + $0x20] sm:$0xf0] %v834_v11  ;;  %1585 = vmatprep.subr.mxu1 %v1652_v2  ;;  %1516 = vmatprep.subr.msk.mxu0 %vm228_vm4, %v952_v12 }
 0x293   :  { %1496 = vmatmul.mubr.msk.f32.vlgmr.msra.gmra.mxu0 %vm622_vm0, %v2008_v10 }
 0x294   :  { %v808_v15 = vpop.permute.xlu0 %807  ;;  %v828_v16 = vpop.permute.xlu1 %827  ;;  %v594_v17 = vld [vmem:[#allocation3 + $0x28] sm:$0xff]  ;;  %1517 = vmatpush1.msk.msra.mxu0 %vm228_vm4, %v951_v63  ;;  %1036 = vmatprep.mubr.f32.mxu0 %v1652_v2 }
 0x295   :  { %v813_v48 = vsel %vm70_vm9, %v808_v15, %v1935_v13  ;;  %v833_v19 = vsel %vm91_vm10, %v828_v16, %v830_v7  ;;  %1586 = vmatpush3.msra.mxu1 %v594_v17  ;;  %996 = vmatprep.subr.mxu0 %v949_v18  ;;  %v953_v13 = vld [vmem:[#allocation2 + $0x70] sm:$0xf] }
 0x296   :  { %818 = vst [vmem:[#allocation2 + $0x18] sm:$0xf] %v813_v48  ;;  %838 = vst [vmem:[#allocation2 + $0x18] sm:$0xf0] %v833_v19  ;;  %1587 = vmatprep.subr.mxu1 %v1652_v2  ;;  %997 = vmatpush1.msra.mxu0 %v948_v21 }
 0x297   :  { %1588 = vmatpush3.msra.mxu1 %v591_v22  ;;  %998 = vmatprep.subr.mxu0 %v946_v23 }
 0x298   :  { %v791_v25 = vpop.permute.xlu0 %790  ;;  %1592 = vmatprep.subr.mxu1 %v1652_v2  ;;  %v793_v26 = vpop.permute.xlu1 %792  ;;  %1590 = vmatmul.mubr.msk.f32.vlgmr.msra.gmra.mxu1 %vm622_vm0, %v2008_v10  ;;  %v944_v34 = vld [vmem:[#allocation2 + $0x28] sm:$0xff] }
 0x299   :  { %v795_v28 = vsel %vm49_vm11, %v791_v25, %v793_v26  ;;  %801 = vst.msk [vmem:[#allocation2 + $0x10] sm:$0xf0] %vm57_vm5, %v793_v26  ;;  %1593 = vmatpush3.msk.msra.mxu1 %vm228_vm4, %v953_v13  ;;  %999 = vmatpush1.msra.mxu0 %v945_v27  ;;  %v943_v29 = vld [vmem:[#allocation2 + $0x20] sm:$0xff] }
 0x29a   :  { %800 = vst [vmem:[#allocation2 + $0x8] sm:$0xf0] %v795_v28  ;;  %1594 = vmatprep.subr.mxu1 %v1652_v2  ;;  %1000 = vmatprep.subr.mxu0 %v943_v29 }
 0x29b   :  { %1595 = vmatpush3.msra.mxu1 %v950_v30  ;;  %1602 = vmatprep.mubr.msk.f32.mxu1 %vm1661_vm1, %v1652_v2 }
 0x29c   :  { %v789_v4 = vpop.permute.xlu0 %788  ;;  %1596 = vmatprep.subr.mxu1 %v1652_v2 }
 0x29d   :  { %v794_v14 = vsel %vm49_vm11, %v789_v4, %v791_v25  ;;  %1597 = vmatpush3.msra.mxu1 %v947_v31  ;;  %v942_v32 = vld [vmem:[#allocation2 + $0x18] sm:$0xff] }
 0x29e   :  { %799 = vst [vmem:[#allocation2] sm:$0xf0] %v794_v14  ;;  %1598 = vmatprep.subr.mxu1 %v1652_v2  ;;  %1001 = vmatpush1.msra.mxu0 %v942_v32 }
 0x29f   :  { %1599 = vmatpush3.msra.mxu1 %v944_v34 }
 0x2a0   :  { %1600 = vmatprep.subr.mxu1 %v1652_v2  ;;  %v941_v35 = vld [vmem:[#allocation2 + $0x10] sm:$0xff] }
 0x2a1   :  { %v940_v36 = vld [vmem:[#allocation2 + $0x8] sm:$0xff]  ;;  %1601 = vmatpush3.msra.mxu1 %v941_v35 }
 0x2a2   :  { %1002 = vmatprep.subr.mxu0 %v940_v36  ;;  %1603 = vmatmul.mubr.msk.f32.vlgmr.msra.gmra.mxu1 %vm224_vm12, %v1807_v6 }
 0x2a3   :  { %1605 = vmatprep.subr.mxu1 %v1652_v2  ;;  %1623 = vmatprep.mubr.msk.f32.mxu1 %vm1661_vm1, %v1652_v2  ;;  %vm2180_vm1 = vcmask 1047704  }
 0x2a5   :  { %v939_v37 = vld [vmem:[#allocation2] sm:$0xff]  ;;  %v958_v44 = vpop.permute.xlu1 %957 }
 0x2a6   :  { %1003 = vmatpush1.msra.mxu0 %v939_v37 }
 0x2a7   :  { %1518 = vmatmul.mubr.msk.f32.vlgmr.msra.gmra.mxu0 %vm224_vm12, %v1807_v6 }
 0x2a8   :  { %1403 = vmatprep.mubr.f32.mxu0 %v1652_v2 }
 0x353   :  { %v2046_v40 = vpop.f32.mrf.mxu0 }
 0x355   :  { %v2048_v43 = vpop.f32.mrf.mxu0 }
 0x358   :  { %v2044_v38 = vpop.f32.mrf.mxu1 }
 0x35a   :  { %v1591_v39 = vpop.f32.mrf.mxu1 }
 0x362   :  { %v1109_v41 = vpop.f32.mrf.mxu1 }
 0x363   :  { %v1110_v47 = vadd.f32 %v1109_v41, %v958_v44 }
 0x364   :  { %v1604_v42 = vpop.f32.mrf.mxu1 }
 0x365   :  { %v1115_v52 = vmax.f32 %v1110_v47, 0.0 }
 0x367   :  { %v1038_v45 = vpop.f32.mrf.mxu0  ;;  %v1118_v55 = vmul.f32 %v1115_v52, %v1825_v20 }
 0x368   :  { %v1039_v46 = vadd.f32 %v1038_v45, %v958_v44 }
 0x369   :  { %v1040_v49 = vpop.f32.mrf.mxu0 }
 0x36a   :  { %v1113_v50 = vmax.f32 %v1039_v46, 0.0  ;;  %v1041_v51 = vadd.f32 %v1040_v49, %v958_v44 }
 0x36c   :  { %v1114_v6 = vmax.f32 %v1041_v51, 0.0  ;;  %v1116_v53 = vmul.f32 %v1113_v50, %v1827_v24 }
 0x36e   :  { %v1117_v54 = vmul.f32 %v1114_v6, %v1831_v33  ;;  %1122 = vrot.lane.b32.xlu0 %v1116_v53, %s1663_s5 }
 0x370   :  { %1124 = vrot.lane.b32.xlu1 %v1117_v54, %s1663_s5 }
 0x372   :  { %1126 = vrot.lane.b32.xlu0 %v1118_v55, %s1663_s5 }
 0x3e0   :  { %v1123_v56 = vpop.permute.xlu0 %1122 }
 0x3e1   :  { %1133 = vst.msk [vmem:[#allocation4] sm:$0xff] %vm2180_vm1, %v1123_v56 }
 0x3e2   :  { %v1125_v57 = vpop.permute.xlu1 %1124 }
 0x3e3   :  { %v2058_v58 = vsel %vm410_vm15, %v1123_v56, %v1125_v57 }
 0x3e4   :  { %v1127_v59 = vpop.permute.xlu0 %1126 }
 0x3e5   :  { %v1129_v24 = vsel %vm410_vm15, %v1125_v57, %v1127_v59 }
 0x3e6   :  { %1135 = vst.msk [vmem:[#allocation4 + $0x10] sm:$0xff] %vm419_vm13, %v1129_v24 }
 0x3e8   :  { %v2062_v33 = vld [vmem:[#allocation4] sm:$0xff] }
 0x3e9   :  { %1288 = vrot.lane.b32.xlu1 %v2062_v33, %s1653_s25  ;;  %1268 = vrot.lane.b32.xlu0 %v2062_v33, %s1655_s29 }
 0x3ed   :  { %1248 = vrot.lane.b32.xlu1 %v2062_v33, %s1654_s26  ;;  %1228 = vrot.lane.b32.xlu0 %v2062_v33, %s1657_s11  ;;  %v1284_v20 = vld [vmem:[#allocation4 + $0x10] sm:$0xff] }
 0x3ee   :  { %1141 = vst.msk [vmem:[#allocation3 + $0x10] sm:$0xff] %vm426_vm14, %v1284_v20 }
 0x3f1   :  { %1208 = vrot.lane.b32.xlu1 %v2062_v33, %s1656_s8  ;;  %1188 = vrot.lane.b32.xlu0 %v2062_v33, %s1659_s19 }
 0x3f5   :  { %1168 = vrot.lane.b32.xlu1 %v2062_v33, %s1658_s14  ;;  %1292 = vrot.lane.b32.xlu0 %v1284_v20, %s1653_s25  ;;  %v1305_v53 = vld [vmem:[#allocation3 + $0x10] sm:$0xff] }
 0x3f9   :  { %1290 = vrot.lane.b32.xlu1 %v2058_v58, %s1653_s25  ;;  %1270 = vrot.lane.b32.xlu0 %v2058_v58, %s1655_s29 }
 0x3fd   :  { %1272 = vrot.lane.b32.xlu1 %v1284_v20, %s1655_s29  ;;  %1252 = vrot.lane.b32.xlu0 %v1284_v20, %s1654_s26 }
 0x401   :  { %1250 = vrot.lane.b32.xlu1 %v2058_v58, %s1654_s26  ;;  %1230 = vrot.lane.b32.xlu0 %v2058_v58, %s1657_s11 }
 0x405   :  { %1232 = vrot.lane.b32.xlu1 %v1284_v20, %s1657_s11  ;;  %1212 = vrot.lane.b32.xlu0 %v1284_v20, %s1656_s8 }
 0x409   :  { %1210 = vrot.lane.b32.xlu1 %v2058_v58, %s1656_s8  ;;  %1190 = vrot.lane.b32.xlu0 %v2058_v58, %s1659_s19 }
 0x40d   :  { %1192 = vrot.lane.b32.xlu1 %v1284_v20, %s1659_s19  ;;  %1172 = vrot.lane.b32.xlu0 %v1284_v20, %s1658_s14 }
 0x411   :  { %1170 = vrot.lane.b32.xlu1 %v2058_v58, %s1658_s14  ;;  %1150 = vrot.lane.b32.xlu0 %v2058_v58, %s1660_s22 }
 0x415   :  { %1148 = vrot.lane.b32.xlu0 %v2062_v33, %s1660_s22  ;;  %1152 = vrot.lane.b32.xlu1 %v1284_v20, %s1660_s22 }
 0x419   :  { %1333 = vperm.xlu0 %1638, %v1330_v60   ;;  %619 = vperm.xlu1 %1639, %v1330_v60  }
 0x45b   :  { %v1289_v61 = vpop.permute.xlu1 %1288  ;;  %v1269_v62 = vpop.permute.xlu0 %1268 }
 0x45f   :  { %v1249_v0 = vpop.permute.xlu1 %1248  ;;  %v1229_v1 = vpop.permute.xlu0 %1228 }
 0x463   :  { %v1209_v3 = vpop.permute.xlu1 %1208  ;;  %v1189_v5 = vpop.permute.xlu0 %1188 }
 0x467   :  { %v2108_v7 = vpop.permute.xlu1 %1168  ;;  %v1293_v8 = vpop.permute.xlu0 %1292 }
 0x468   :  { %1301 = vst.msk [vmem:[#allocation3 + $0xd0] sm:$0xff] %vm426_vm14, %v1293_v8 }
 0x46b   :  { %v1291_v9 = vpop.permute.xlu1 %1290  ;;  %v1271_v11 = vpop.permute.xlu0 %1270 }
 0x46c   :  { %v1294_v12 = vsel %vm193_vm2, %v1289_v61, %v1291_v9  ;;  %v1295_v63 = vsel %vm193_vm2, %v1291_v9, %v1293_v8  ;;  %v1274_v15 = vsel %vm173_vm6, %v1269_v62, %v1271_v11 }
 0x46d   :  { %1353 = vmatprep.subr.mxu0 %v1295_v63 }
 0x46e   :  { %1354 = vmatpush1.msra.mxu0 %v1294_v12 }
 0x46f   :  { %v1273_v16 = vpop.permute.xlu1 %1272  ;;  %v1253_v17 = vpop.permute.xlu0 %1252  ;;  %v1329_v18 = vld [vmem:[#allocation3 + $0xd0] sm:$0xff] }
 0x470   :  { %v1275_v48 = vsel %vm173_vm6, %v1271_v11, %v1273_v16  ;;  %1281 = vst.msk [vmem:[#allocation3 + $0xb8] sm:$0xff] %vm426_vm14, %v1273_v16  ;;  %1261 = vst.msk [vmem:[#allocation3 + $0xa0] sm:$0xff] %vm426_vm14, %v1253_v17  ;;  %1606 = vmatpush3.msra.mxu1 %v1329_v18 }
 0x471   :  { %1607 = vmatprep.subr.mxu1 %v1652_v2  ;;  %1355 = vmatprep.subr.mxu0 %v1275_v48 }
 0x472   :  { %1356 = vmatpush1.msra.mxu0 %v1274_v15 }
 0x473   :  { %v1251_v19 = vpop.permute.xlu1 %1250  ;;  %v1231_v21 = vpop.permute.xlu0 %1230 }
 0x474   :  { %v1254_v22 = vsel %vm152_vm3, %v1249_v0, %v1251_v19  ;;  %v1255_v23 = vsel %vm152_vm3, %v1251_v19, %v1253_v17  ;;  %v1234_v25 = vsel %vm132_vm8, %v1229_v1, %v1231_v21 }
 0x475   :  { %1357 = vmatprep.subr.mxu0 %v1255_v23 }
 0x476   :  { %1358 = vmatpush1.msra.mxu0 %v1254_v22 }
 0x477   :  { %v1233_v26 = vpop.permute.xlu1 %1232  ;;  %v1213_v13 = vpop.permute.xlu0 %1212  ;;  %v1326_v27 = vld [vmem:[#allocation3 + $0xb8] sm:$0xff]  ;;  %v1323_v29 = vld [vmem:[#allocation3 + $0xa0] sm:$0xff] }
 0x478   :  { %v1235_v28 = vsel %vm132_vm8, %v1231_v21, %v1233_v26  ;;  %1241 = vst.msk [vmem:[#allocation3 + $0x88] sm:$0xff] %vm426_vm14, %v1233_v26  ;;  %1221 = vst.msk [vmem:[#allocation3 + $0x70] sm:$0xff] %vm426_vm14, %v1213_v13  ;;  %1608 = vmatpush3.msra.mxu1 %v1326_v27 }
 0x479   :  { %1609 = vmatprep.subr.mxu1 %v1652_v2  ;;  %1359 = vmatprep.subr.mxu0 %v1235_v28 }
 0x47a   :  { %1610 = vmatpush3.msra.mxu1 %v1323_v29  ;;  %1360 = vmatpush1.msra.mxu0 %v1234_v25 }
 0x47b   :  { %v1211_v30 = vpop.permute.xlu1 %1210  ;;  %v1191_v4 = vpop.permute.xlu0 %1190  ;;  %1611 = vmatprep.subr.mxu1 %v1652_v2 }
 0x47c   :  { %v1214_v31 = vsel %vm111_vm7, %v1209_v3, %v1211_v30  ;;  %v1215_v14 = vsel %vm111_vm7, %v1211_v30, %v1213_v13  ;;  %v1194_v32 = vsel %vm91_vm10, %v1189_v5, %v1191_v4 }
 0x47d   :  { %1361 = vmatprep.subr.mxu0 %v1215_v14 }
 0x47e   :  { %1362 = vmatpush1.msra.mxu0 %v1214_v31 }
 0x47f   :  { %v1193_v34 = vpop.permute.xlu1 %1192  ;;  %v1173_v35 = vpop.permute.xlu0 %1172  ;;  %v1320_v36 = vld [vmem:[#allocation3 + $0x88] sm:$0xff]  ;;  %v1317_v39 = vld [vmem:[#allocation3 + $0x70] sm:$0xff] }
 0x480   :  { %v1195_v37 = vsel %vm91_vm10, %v1191_v4, %v1193_v34  ;;  %1201 = vst.msk [vmem:[#allocation3 + $0x58] sm:$0xff] %vm426_vm14, %v1193_v34  ;;  %1181 = vst.msk [vmem:[#allocation3 + $0x40] sm:$0xff] %vm426_vm14, %v1173_v35  ;;  %1612 = vmatpush3.msra.mxu1 %v1320_v36 }
 0x481   :  { %1613 = vmatprep.subr.mxu1 %v1652_v2  ;;  %1363 = vmatprep.subr.mxu0 %v1195_v37 }
 0x482   :  { %1614 = vmatpush3.msra.mxu1 %v1317_v39  ;;  %1364 = vmatpush1.msra.mxu0 %v1194_v32 }
 0x483   :  { %v1171_v41 = vpop.permute.xlu1 %1170  ;;  %v1151_v42 = vpop.permute.xlu0 %1150  ;;  %1615 = vmatprep.subr.mxu1 %v1652_v2 }
 0x484   :  { %v1174_v44 = vsel %vm70_vm9, %v2108_v7, %v1171_v41  ;;  %v1175_v45 = vsel %vm70_vm9, %v1171_v41, %v1173_v35 }
 0x485   :  { %1365 = vmatprep.subr.mxu0 %v1175_v45 }
 0x486   :  { %1366 = vmatpush1.msra.mxu0 %v1174_v44 }
 0x487   :  { %v1153_v46 = vpop.permute.xlu1 %1152  ;;  %v1149_v47 = vpop.permute.xlu0 %1148  ;;  %v1314_v49 = vld [vmem:[#allocation3 + $0x58] sm:$0xff]  ;;  %v1311_v52 = vld [vmem:[#allocation3 + $0x40] sm:$0xff] }
 0x488   :  { %v1155_v50 = vsel %vm49_vm11, %v1151_v42, %v1153_v46  ;;  %1161 = vst.msk [vmem:[#allocation3 + $0x28] sm:$0xff] %vm426_vm14, %v1153_v46  ;;  %v1154_v51 = vsel %vm49_vm11, %v1149_v47, %v1151_v42  ;;  %1616 = vmatpush3.msra.mxu1 %v1314_v49 }
 0x489   :  { %1617 = vmatprep.subr.mxu1 %v1652_v2  ;;  %1367 = vmatprep.subr.mxu0 %v1155_v50 }
 0x48a   :  { %1618 = vmatpush3.msra.mxu1 %v1311_v52  ;;  %1368 = vmatpush1.msra.mxu0 %v1154_v51 }
 0x48b   :  { %1619 = vmatprep.subr.mxu1 %v1652_v2  ;;  %1369 = vmatprep.subr.mxu0 %v2058_v58 }
 0x48c   :  { %1370 = vmatpush1.msra.mxu0 %v2062_v33 }
 0x48d   :  { %1521 = vmatmul.mubr.msk.f32.vlgmr.msra.gmra.mxu0 %vm622_vm0, %v2008_v10 }
 0x48f   :  { %v1308_v6 = vld [vmem:[#allocation3 + $0x28] sm:$0xff] }
 0x490   :  { %1620 = vmatpush3.msra.mxu1 %v1308_v6 }
 0x491   :  { %1621 = vmatprep.subr.mxu1 %v1652_v2 }
 0x492   :  { %1622 = vmatpush3.msra.mxu1 %v1305_v53 }
 0x493   :  { %1624 = vmatmul.mubr.msk.f32.vlgmr.msra.gmra.mxu1 %vm622_vm0, %v2008_v10 }
 0x494   :  { %v620_v54 = vpop.permute.xlu1 %619  ;;  %v1334_v2 = vpop.permute.xlu0 %1333 }
 0x495   :  { %v693_v55 = vadd.f32 %v2046_v40, %v620_v54  ;;  %v695_v56 = vadd.f32 %v2048_v43, %v620_v54  ;;  %v764_v57 = vadd.f32 %v2044_v38, %v620_v54 }
 0x497   :  { %v767_v58 = vmax.f32 %v693_v55, 0.0  ;;  %v768_v59 = vmax.f32 %v695_v56, 0.0  ;;  %v769_v24 = vmax.f32 %v764_v57, 0.0 }
 0x499   :  { %770 = vst [vmem:[%s2178_s6] sm:$0xff] %v767_v58  ;;  %771 = vst [vmem:[%s2178_s6 + $0x8] sm:$0xff] %v768_v59 }
 0x49a   :  { %772 = vst.msk [vmem:[%s2178_s6 + $0x10] sm:$0xff] %vm426_vm14, %v769_v24 }
 0x54d   :  { %v1405_v10 = vpop.f32.mrf.mxu0 }
 0x54e   :  { %v1406_v40 = vadd.f32 %v1405_v10, %v1334_v2 }
 0x54f   :  { %v1407_v38 = vpop.f32.mrf.mxu0 }
 0x550   :  { %v1480_v43 = vmax.f32 %v1406_v40, 0.0  ;;  %v1408_v33 = vadd.f32 %v1407_v38, %v1334_v2 }
 0x552   :  { %1523 = vst [vmem:[%s2178_s6 + $0x18] sm:$0xff] %v1480_v43  ;;  %v1481_v20 = vmax.f32 %v1408_v33, 0.0 }
 0x553   :  { %v1476_v60 = vpop.f32.mrf.mxu1 }
 0x554   :  { %v1477_v61 = vadd.f32 %v1476_v60, %v1334_v2  ;;  %1524 = vst [vmem:[%s2178_s6 + $0x20] sm:$0xff] %v1481_v20 }
 0x555   :  { %v1625_v62 = vpop.f32.mrf.mxu1 }
 0x556   :  { %v1482_v0 = vmax.f32 %v1477_v61, 0.0 }
 0x558   :  { %1525 = vst.msk [vmem:[%s2178_s6 + $0x28] sm:$0xff] %vm426_vm14, %v1482_v0 }

</bundles_post_ra>
